<compile_context>
chip_gen: v7x
topology: tpu7x:2x2x1
jax: 0.10.0
libtpu: 0.0.40
codegen_flags: <defaults>
</compile_context>

<pallas_src>
import functools

import jax
import jax.numpy as jnp
from jax import lax
from jax.experimental import pallas as pl
from jax.experimental.pallas import tpu as pltpu


def _round_up(x, m):
    return ((x + m - 1) // m) * m


def gru_kernel(x_ref, wih_ref, gib_ref, whh_ref, bhhn_ref, out_ref, hn_ref, gi_ref,
               *, seq_len):
    """Fused input projection + sequential GRU recurrence in one program.

    x_ref:    (T, Bp, D)     time-major, batch-padded input
    wih_ref:  (D, 3*Hp)      W_ih^T, gate-padded to 128 lanes per gate
    gib_ref:  (1, 3*Hp)      b_ih (all gates) + b_hh (r, z gates), folded
    whh_ref:  (Hp, 3*Hp)     W_hh^T, gate-padded
    bhhn_ref: (1, Hp)        b_hh of the n gate (scaled by r, not foldable)
    out_ref:  (T, Bp, Hp)    per-step hidden states (lane-dense stores)
    hn_ref:   (Bp, Hp)       final hidden state (written once)
    gi_ref:   (T, Bp, 3*Hp)  VMEM scratch holding the precomputed input projection
    """
    T = seq_len
    Bp = x_ref.shape[1]
    D = x_ref.shape[2]
    Hp = whh_ref.shape[0]

    # ---- Prologue (off the serial path): one (T*Bp, D) @ (D, 3*Hp) MXU matmul for all
    # timesteps, biases folded in, result parked in VMEM scratch.
    x_all = x_ref[...].reshape(T * Bp, D)              # sublane-merge, layout-preserving
    gi_all = jnp.dot(x_all, wih_ref[...],
                     preferred_element_type=jnp.float32) + gib_ref[...]
    gi_ref[...] = gi_all.reshape(T, Bp, 3 * Hp)

    bhh_n = bhhn_ref[...]                              # (1, Hp): single vreg live in loop

    def step(t, h):
        gi = gi_ref[t]                                 # (Bp, 3*Hp), lane-aligned gates
        # Re-read W_hh^T from VMEM each step: keeps live ranges bounded (no 48-vreg
        # value across the loop); the loads hide under matmul latency.
        gh = jnp.dot(h, whh_ref[...], preferred_element_type=jnp.float32)
        r = jax.nn.sigmoid(gi[:, 0:Hp] + gh[:, 0:Hp])
        z = jax.nn.sigmoid(gi[:, Hp:2 * Hp] + gh[:, Hp:2 * Hp])
        n = jnp.tanh(gi[:, 2 * Hp:] + r * (gh[:, 2 * Hp:] + bhh_n))
        h_new = (1.0 - z) * n + z * h
        out_ref[t] = h_new.astype(out_ref.dtype)       # full-vreg, unmasked (8,128) store
        return h_new

    h0 = jnp.zeros((Bp, Hp), jnp.float32)
    h_last = lax.fori_loop(0, T, step, h0, unroll=True)
    hn_ref[...] = h_last.astype(hn_ref.dtype)          # final state written once


def prepare_gru_weights(w_ih, w_hh, b_ih, b_hh, hidden_size):
    """One-time weight preprocessing (hoisted out of the per-call path).

    PyTorch GRU layout: w_ih (3H, D), w_hh (3H, H), biases (3H,), gate order (r, z, n).
    Returns gate-padded, transposed tensors ready for the kernel.
    """
    H = hidden_size
    D = w_ih.shape[1]
    Hp = _round_up(H, 128)  # pad each gate to a full 128-lane vreg

    w_ih_g = w_ih.reshape(3, H, D)
    w_hh_g = w_hh.reshape(3, H, H)
    b_ih_g = b_ih.reshape(3, H)
    b_hh_g = b_hh.reshape(3, H)

    w_ih_p = jnp.pad(w_ih_g, ((0, 0), (0, Hp - H), (0, 0)))        # (3, Hp, D)
    w_hh_p = jnp.pad(w_hh_g, ((0, 0), (0, Hp - H), (0, Hp - H)))   # (3, Hp, Hp)
    b_ih_p = jnp.pad(b_ih_g, ((0, 0), (0, Hp - H)))                # (3, Hp)
    b_hh_p = jnp.pad(b_hh_g, ((0, 0), (0, Hp - H)))                # (3, Hp)

    wih_t = jnp.transpose(w_ih_p, (2, 0, 1)).reshape(D, 3 * Hp)    # W_ih^T, gate-padded
    whh_t = jnp.transpose(w_hh_p, (2, 0, 1)).reshape(Hp, 3 * Hp)   # W_hh^T, gate-padded
    # Fold b_ih (all gates) and b_hh (r, z gates); n-gate hidden bias stays separate.
    gi_bias = b_ih_p.at[0].add(b_hh_p[0]).at[1].add(b_hh_p[1]).reshape(1, 3 * Hp)
    bhh_n = b_hh_p[2].reshape(1, Hp)

    return (wih_t.astype(jnp.float32), whh_t.astype(jnp.float32),
            gi_bias.astype(jnp.float32), bhh_n.astype(jnp.float32))


def gru_forward(x, wih_t, whh_t, gi_bias, bhh_n, hidden_size):
    """x: (B, T, D) batch-first.  Weights already prepared.  Returns (output, h_n)."""
    B, T, D = x.shape
    H = hidden_size
    Hp = whh_t.shape[0]
    Bp = _round_up(B, 8)     # pad batch to sublane height

    # Activation-only per-call prep: pad batch, go time-major (tiny arrays).
    x_p = jnp.pad(x, ((0, Bp - B), (0, 0), (0, 0)))
    x_tm = jnp.transpose(x_p, (1, 0, 2)).astype(jnp.float32)        # (T, Bp, D)

    kernel = functools.partial(gru_kernel, seq_len=T)

    out_pad, hn_pad = pl.pallas_call(
        kernel,
        out_shape=(
            jax.ShapeDtypeStruct((T, Bp, Hp), x.dtype),
            jax.ShapeDtypeStruct((Bp, Hp), x.dtype),
        ),
        grid_spec=pltpu.PrefetchScalarGridSpec(
            num_scalar_prefetch=0,
            grid=(1,),                                              # single sequential program
            in_specs=[
                pl.BlockSpec((T, Bp, D), lambda i: (0, 0, 0)),      # x (whole sequence)
                pl.BlockSpec((D, 3 * Hp), lambda i: (0, 0)),        # W_ih^T
                pl.BlockSpec((1, 3 * Hp), lambda i: (0, 0)),        # folded input bias
                pl.BlockSpec((Hp, 3 * Hp), lambda i: (0, 0)),       # W_hh^T
                pl.BlockSpec((1, Hp), lambda i: (0, 0)),            # b_hh[n]
            ],
            out_specs=[
                pl.BlockSpec((T, Bp, Hp), lambda i: (0, 0, 0)),     # all per-step outputs
                pl.BlockSpec((Bp, Hp), lambda i: (0, 0)),           # final hidden state
            ],
            scratch_shapes=[pltpu.VMEM((T, Bp, 3 * Hp), jnp.float32)],  # gi scratch
        ),
        compiler_params=pltpu.CompilerParams(
            dimension_semantics=("arbitrary",)),                    # recurrence is sequential
    )(x_tm, wih_t, gi_bias, whh_t, bhh_n)

    # Strip batch / gate padding outside the kernel (time-major -> batch-first).
    output = jnp.transpose(out_pad, (1, 0, 2))[:B, :, :H]           # (B, T, H)
    h_n = hn_pad[:B, :H][None]                                      # (1, B, H)
    return output, h_n

# TODO(synk): num_layers>1 stacking, dropout, and time-chunked BlockSpecs for long
# sequences are not implemented (module defaults: num_layers=1, dropout=0, T is small).


def gru_reference(x, w_ih, w_hh, b_ih, b_hh, hidden_size):
    """Pure-JAX reference matching torch.nn.GRU semantics."""
    B, T, D = x.shape
    H = hidden_size

    def step(h, x_t):
        gi = x_t @ w_ih.T + b_ih
        gh = h @ w_hh.T + b_hh
        r = jax.nn.sigmoid(gi[:, 0:H] + gh[:, 0:H])
        z = jax.nn.sigmoid(gi[:, H:2 * H] + gh[:, H:2 * H])
        n = jnp.tanh(gi[:, 2 * H:] + r * gh[:, 2 * H:])
        h_new = (1.0 - z) * n + z * h
        return h_new, h_new

    h0 = jnp.zeros((B, H), x.dtype)
    h_last, ys = lax.scan(step, h0, jnp.transpose(x, (1, 0, 2)))
    return jnp.transpose(ys, (1, 0, 2)), h_last[None]


if __name__ == "__main__":
    # RecurrentModule(in_shape=(8, 16), hidden_size=32)  ->  input_size = 8 * 16 = 128
    in_shape = (8, 16)
    input_size = in_shape[-1] * in_shape[-2]    # 128
    hidden_size = 32
    batch, seq = 2, 8

    key = jax.random.PRNGKey(0)
    kx, k1, k2, k3, k4 = jax.random.split(key, 5)

    # Deterministic parameter init mimicking PyTorch: U(-1/sqrt(H), 1/sqrt(H)).
    bound = 1.0 / (hidden_size ** 0.5)
    w_ih = jax.random.uniform(k1, (3 * hidden_size, input_size),
                              jnp.float32, -bound, bound)
    w_hh = jax.random.uniform(k2, (3 * hidden_size, hidden_size),
                              jnp.float32, -bound, bound)
    b_ih = jax.random.uniform(k3, (3 * hidden_size,), jnp.float32, -bound, bound)
    b_hh = jax.random.uniform(k4, (3 * hidden_size,), jnp.float32, -bound, bound)

    x = jax.random.normal(kx, (batch, seq, input_size), jnp.float32)

    # One-time weight preprocessing (hoisted out of the per-call path).
    wih_t, whh_t, gi_bias, bhh_n = jax.block_until_ready(
        prepare_gru_weights(w_ih, w_hh, b_ih, b_hh, hidden_size))

    fwd = jax.jit(functools.partial(gru_forward, hidden_size=hidden_size))
    output, h_n = jax.block_until_ready(fwd(x, wih_t, whh_t, gi_bias, bhh_n))

    ref_out, ref_hn = gru_reference(x, w_ih, w_hh, b_ih, b_hh, hidden_size)

    assert output.shape == (batch, seq, hidden_size)
    assert h_n.shape == (1, batch, hidden_size)
    assert jnp.allclose(output, ref_out, atol=1e-5, rtol=1e-5)
    assert jnp.allclose(h_n, ref_hn, atol=1e-5, rtol=1e-5)

    print("KERNEL_OK")
</pallas_src>

<mosaic_0001>
module attributes {stable_mosaic.version = 11 : i64} {
  func.func @gru_kernel(%arg0: i32, %arg1: memref<8x8x128xf32, #tpu.memory_space<vmem>>, %arg2: memref<128x384xf32, #tpu.memory_space<vmem>>, %arg3: memref<1x384xf32, #tpu.memory_space<vmem>>, %arg4: memref<128x384xf32, #tpu.memory_space<vmem>>, %arg5: memref<1x128xf32, #tpu.memory_space<vmem>>, %arg6: memref<8x8x128xf32, #tpu.memory_space<vmem>>, %arg7: memref<8x128xf32, #tpu.memory_space<vmem>>, %arg8: memref<8x8x384xf32, #tpu.memory_space<vmem>>) attributes {dimension_semantics = [#tpu.dimension_semantics<arbitrary>], iteration_bounds = array<i64: 1>, scalar_prefetch = 0 : i64, scratch_operands = 1 : i64, tpu.core_type = #tpu.core_type<tc>, window_params = [{pipeline_mode = #tpu.pipeline_mode<synchronous>, transform_indices = @transform_0, window_bounds = array<i64: 8, 8, 128>}, {pipeline_mode = #tpu.pipeline_mode<synchronous>, transform_indices = @transform_1, window_bounds = array<i64: 128, 384>}, {pipeline_mode = #tpu.pipeline_mode<synchronous>, transform_indices = @transform_2, window_bounds = array<i64: 1, 384>}, {pipeline_mode = #tpu.pipeline_mode<synchronous>, transform_indices = @transform_3, window_bounds = array<i64: 128, 384>}, {pipeline_mode = #tpu.pipeline_mode<synchronous>, transform_indices = @transform_4, window_bounds = array<i64: 1, 128>}, {pipeline_mode = #tpu.pipeline_mode<synchronous>, transform_indices = @transform_5, window_bounds = array<i64: 8, 8, 128>}, {pipeline_mode = #tpu.pipeline_mode<synchronous>, transform_indices = @transform_6, window_bounds = array<i64: 8, 128>}]} {
    %c0 = arith.constant 0 : index
    %c0_0 = arith.constant 0 : index
    %c0_1 = arith.constant 0 : index
    %0 = vector.load %arg1[%c0, %c0_0, %c0_1] : memref<8x8x128xf32, #tpu.memory_space<vmem>>, vector<8x8x128xf32>
    %1 = vector.shape_cast %0 : vector<8x8x128xf32> to vector<64x128xf32>
    %c0_2 = arith.constant 0 : index
    %c0_3 = arith.constant 0 : index
    %2 = vector.load %arg2[%c0_2, %c0_3] : memref<128x384xf32, #tpu.memory_space<vmem>>, vector<128x384xf32>
    %cst = arith.constant dense<0.000000e+00> : vector<64x384xf32>
    %3 = tpu.matmul %1, %2, %cst {dimension_numbers = #tpu.dot_dimension_numbers<[1], [0], [0], [1], [0, 0, 1, 1], [], []>} : vector<64x128xf32>, vector<128x384xf32>, vector<64x384xf32> -> vector<64x384xf32>
    %c0_4 = arith.constant 0 : index
    %c0_5 = arith.constant 0 : index
    %4 = vector.load %arg3[%c0_4, %c0_5] : memref<1x384xf32, #tpu.memory_space<vmem>>, vector<1x384xf32>
    %5 = vector.broadcast %4 : vector<1x384xf32> to vector<64x384xf32>
    %6 = arith.addf %3, %5 : vector<64x384xf32>
    %7 = vector.shape_cast %6 : vector<64x384xf32> to vector<8x8x384xf32>
    %c0_6 = arith.constant 0 : index
    %c0_7 = arith.constant 0 : index
    %c0_8 = arith.constant 0 : index
    %8 = vector.load %arg8[%c0_6, %c0_7, %c0_8] : memref<8x8x384xf32, #tpu.memory_space<vmem>>, vector<8x8x384xf32>
    tpu.vector_store %arg8[%c0_6, %c0_7, %c0_8], %7 {strides = array<i32>} : memref<8x8x384xf32, #tpu.memory_space<vmem>>, vector<8x8x384xf32>,
    %c0_9 = arith.constant 0 : index
    %c0_10 = arith.constant 0 : index
    %9 = vector.load %arg5[%c0_9, %c0_10] : memref<1x128xf32, #tpu.memory_space<vmem>>, vector<1x128xf32>
    %cst_11 = arith.constant 0.000000e+00 : f32
    %10 = vector.broadcast %cst_11 : f32 to vector<8x128xf32>
    %c0_i32 = arith.constant 0 : i32
    %11 = arith.index_cast %c0_i32 : i32 to index
    %c0_12 = arith.constant 0 : index
    %c0_13 = arith.constant 0 : index
    %12 = vector.load %arg8[%11, %c0_12, %c0_13] : memref<8x8x384xf32, #tpu.memory_space<vmem>>, vector<1x8x384xf32>
    %13 = vector.shape_cast %12 : vector<1x8x384xf32> to vector<8x384xf32>
    %c0_14 = arith.constant 0 : index
    %c0_15 = arith.constant 0 : index
    %14 = vector.load %arg4[%c0_14, %c0_15] : memref<128x384xf32, #tpu.memory_space<vmem>>, vector<128x384xf32>
    %cst_16 = arith.constant dense<0.000000e+00> : vector<8x384xf32>
    %15 = tpu.matmul %10, %14, %cst_16 {dimension_numbers = #tpu.dot_dimension_numbers<[1], [0], [0], [1], [0, 0, 1, 1], [], []>} : vector<8x128xf32>, vector<128x384xf32>, vector<8x384xf32> -> vector<8x384xf32>
    %16 = vector.extract_strided_slice %13 {offsets = [0, 0], sizes = [8, 128], strides = [1, 1]} : vector<8x384xf32> to vector<8x128xf32>
    %17 = vector.extract_strided_slice %15 {offsets = [0, 0], sizes = [8, 128], strides = [1, 1]} : vector<8x384xf32> to vector<8x128xf32>
    %18 = arith.addf %16, %17 : vector<8x128xf32>
    %19 = arith.negf %18 : vector<8x128xf32>
    %20 = math.exp %19 : vector<8x128xf32>
    %cst_17 = arith.constant 1.000000e+00 : f32
    %21 = vector.broadcast %cst_17 : f32 to vector<8x128xf32>
    %22 = arith.addf %21, %20 : vector<8x128xf32>
    %23 = arith.divf %21, %22 : vector<8x128xf32>
    %24 = vector.extract_strided_slice %13 {offsets = [0, 128], sizes = [8, 128], strides = [1, 1]} : vector<8x384xf32> to vector<8x128xf32>
    %25 = vector.extract_strided_slice %15 {offsets = [0, 128], sizes = [8, 128], strides = [1, 1]} : vector<8x384xf32> to vector<8x128xf32>
    %26 = arith.addf %24, %25 : vector<8x128xf32>
    %27 = arith.negf %26 : vector<8x128xf32>
    %28 = math.exp %27 : vector<8x128xf32>
    %cst_18 = arith.constant 1.000000e+00 : f32
    %29 = vector.broadcast %cst_18 : f32 to vector<8x128xf32>
    %30 = arith.addf %29, %28 : vector<8x128xf32>
    %31 = arith.divf %29, %30 : vector<8x128xf32>
    %32 = vector.extract_strided_slice %13 {offsets = [0, 256], sizes = [8, 128], strides = [1, 1]} : vector<8x384xf32> to vector<8x128xf32>
    %33 = vector.extract_strided_slice %15 {offsets = [0, 256], sizes = [8, 128], strides = [1, 1]} : vector<8x384xf32> to vector<8x128xf32>
    %34 = vector.broadcast %9 : vector<1x128xf32> to vector<8x128xf32>
    %35 = arith.addf %33, %34 : vector<8x128xf32>
    %36 = arith.mulf %23, %35 : vector<8x128xf32>
    %37 = arith.addf %32, %36 : vector<8x128xf32>
    %38 = math.tanh %37 : vector<8x128xf32>
    %cst_19 = arith.constant 1.000000e+00 : f32
    %39 = vector.broadcast %cst_19 : f32 to vector<8x128xf32>
    %40 = arith.subf %39, %31 : vector<8x128xf32>
    %41 = arith.mulf %40, %38 : vector<8x128xf32>
    %42 = arith.mulf %31, %10 : vector<8x128xf32>
    %43 = arith.addf %41, %42 : vector<8x128xf32>
    %44 = arith.index_cast %c0_i32 : i32 to index
    %c0_20 = arith.constant 0 : index
    %c0_21 = arith.constant 0 : index
    %45 = vector.load %arg6[%44, %c0_20, %c0_21] : memref<8x8x128xf32, #tpu.memory_space<vmem>>, vector<1x8x128xf32>
    %46 = vector.shape_cast %45 : vector<1x8x128xf32> to vector<8x128xf32>
    %47 = vector.shape_cast %43 : vector<8x128xf32> to vector<1x8x128xf32>
    tpu.vector_store %arg6[%44, %c0_20, %c0_21], %47 {strides = array<i32>} : memref<8x8x128xf32, #tpu.memory_space<vmem>>, vector<1x8x128xf32>,
    %c1_i32 = arith.constant 1 : i32
    %48 = arith.index_cast %c1_i32 : i32 to index
    %c0_22 = arith.constant 0 : index
    %c0_23 = arith.constant 0 : index
    %49 = vector.load %arg8[%48, %c0_22, %c0_23] : memref<8x8x384xf32, #tpu.memory_space<vmem>>, vector<1x8x384xf32>
    %50 = vector.shape_cast %49 : vector<1x8x384xf32> to vector<8x384xf32>
    %c0_24 = arith.constant 0 : index
    %c0_25 = arith.constant 0 : index
    %51 = vector.load %arg4[%c0_24, %c0_25] : memref<128x384xf32, #tpu.memory_space<vmem>>, vector<128x384xf32>
    %cst_26 = arith.constant dense<0.000000e+00> : vector<8x384xf32>
    %52 = tpu.matmul %43, %51, %cst_26 {dimension_numbers = #tpu.dot_dimension_numbers<[1], [0], [0], [1], [0, 0, 1, 1], [], []>} : vector<8x128xf32>, vector<128x384xf32>, vector<8x384xf32> -> vector<8x384xf32>
    %53 = vector.extract_strided_slice %50 {offsets = [0, 0], sizes = [8, 128], strides = [1, 1]} : vector<8x384xf32> to vector<8x128xf32>
    %54 = vector.extract_strided_slice %52 {offsets = [0, 0], sizes = [8, 128], strides = [1, 1]} : vector<8x384xf32> to vector<8x128xf32>
    %55 = arith.addf %53, %54 : vector<8x128xf32>
    %56 = arith.negf %55 : vector<8x128xf32>
    %57 = math.exp %56 : vector<8x128xf32>
    %cst_27 = arith.constant 1.000000e+00 : f32
    %58 = vector.broadcast %cst_27 : f32 to vector<8x128xf32>
    %59 = arith.addf %58, %57 : vector<8x128xf32>
    %60 = arith.divf %58, %59 : vector<8x128xf32>
    %61 = vector.extract_strided_slice %50 {offsets = [0, 128], sizes = [8, 128], strides = [1, 1]} : vector<8x384xf32> to vector<8x128xf32>
    %62 = vector.extract_strided_slice %52 {offsets = [0, 128], sizes = [8, 128], strides = [1, 1]} : vector<8x384xf32> to vector<8x128xf32>
    %63 = arith.addf %61, %62 : vector<8x128xf32>
    %64 = arith.negf %63 : vector<8x128xf32>
    %65 = math.exp %64 : vector<8x128xf32>
    %cst_28 = arith.constant 1.000000e+00 : f32
    %66 = vector.broadcast %cst_28 : f32 to vector<8x128xf32>
    %67 = arith.addf %66, %65 : vector<8x128xf32>
    %68 = arith.divf %66, %67 : vector<8x128xf32>
    %69 = vector.extract_strided_slice %50 {offsets = [0, 256], sizes = [8, 128], strides = [1, 1]} : vector<8x384xf32> to vector<8x128xf32>
    %70 = vector.extract_strided_slice %52 {offsets = [0, 256], sizes = [8, 128], strides = [1, 1]} : vector<8x384xf32> to vector<8x128xf32>
    %71 = vector.broadcast %9 : vector<1x128xf32> to vector<8x128xf32>
    %72 = arith.addf %70, %71 : vector<8x128xf32>
    %73 = arith.mulf %60, %72 : vector<8x128xf32>
    %74 = arith.addf %69, %73 : vector<8x128xf32>
    %75 = math.tanh %74 : vector<8x128xf32>
    %cst_29 = arith.constant 1.000000e+00 : f32
    %76 = vector.broadcast %cst_29 : f32 to vector<8x128xf32>
    %77 = arith.subf %76, %68 : vector<8x128xf32>
    %78 = arith.mulf %77, %75 : vector<8x128xf32>
    %79 = arith.mulf %68, %43 : vector<8x128xf32>
    %80 = arith.addf %78, %79 : vector<8x128xf32>
    %81 = arith.index_cast %c1_i32 : i32 to index
    %c0_30 = arith.constant 0 : index
    %c0_31 = arith.constant 0 : index
    %82 = vector.load %arg6[%81, %c0_30, %c0_31] : memref<8x8x128xf32, #tpu.memory_space<vmem>>, vector<1x8x128xf32>
    %83 = vector.shape_cast %82 : vector<1x8x128xf32> to vector<8x128xf32>
    %84 = vector.shape_cast %80 : vector<8x128xf32> to vector<1x8x128xf32>
    tpu.vector_store %arg6[%81, %c0_30, %c0_31], %84 {strides = array<i32>} : memref<8x8x128xf32, #tpu.memory_space<vmem>>, vector<1x8x128xf32>,
    %c2_i32 = arith.constant 2 : i32
    %85 = arith.index_cast %c2_i32 : i32 to index
    %c0_32 = arith.constant 0 : index
    %c0_33 = arith.constant 0 : index
    %86 = vector.load %arg8[%85, %c0_32, %c0_33] : memref<8x8x384xf32, #tpu.memory_space<vmem>>, vector<1x8x384xf32>
    %87 = vector.shape_cast %86 : vector<1x8x384xf32> to vector<8x384xf32>
    %c0_34 = arith.constant 0 : index
    %c0_35 = arith.constant 0 : index
    %88 = vector.load %arg4[%c0_34, %c0_35] : memref<128x384xf32, #tpu.memory_space<vmem>>, vector<128x384xf32>
    %cst_36 = arith.constant dense<0.000000e+00> : vector<8x384xf32>
    %89 = tpu.matmul %80, %88, %cst_36 {dimension_numbers = #tpu.dot_dimension_numbers<[1], [0], [0], [1], [0, 0, 1, 1], [], []>} : vector<8x128xf32>, vector<128x384xf32>, vector<8x384xf32> -> vector<8x384xf32>
    %90 = vector.extract_strided_slice %87 {offsets = [0, 0], sizes = [8, 128], strides = [1, 1]} : vector<8x384xf32> to vector<8x128xf32>
    %91 = vector.extract_strided_slice %89 {offsets = [0, 0], sizes = [8, 128], strides = [1, 1]} : vector<8x384xf32> to vector<8x128xf32>
    %92 = arith.addf %90, %91 : vector<8x128xf32>
    %93 = arith.negf %92 : vector<8x128xf32>
    %94 = math.exp %93 : vector<8x128xf32>
    %cst_37 = arith.constant 1.000000e+00 : f32
    %95 = vector.broadcast %cst_37 : f32 to vector<8x128xf32>
    %96 = arith.addf %95, %94 : vector<8x128xf32>
    %97 = arith.divf %95, %96 : vector<8x128xf32>
    %98 = vector.extract_strided_slice %87 {offsets = [0, 128], sizes = [8, 128], strides = [1, 1]} : vector<8x384xf32> to vector<8x128xf32>
    %99 = vector.extract_strided_slice %89 {offsets = [0, 128], sizes = [8, 128], strides = [1, 1]} : vector<8x384xf32> to vector<8x128xf32>
    %100 = arith.addf %98, %99 : vector<8x128xf32>
    %101 = arith.negf %100 : vector<8x128xf32>
    %102 = math.exp %101 : vector<8x128xf32>
    %cst_38 = arith.constant 1.000000e+00 : f32
    %103 = vector.broadcast %cst_38 : f32 to vector<8x128xf32>
    %104 = arith.addf %103, %102 : vector<8x128xf32>
    %105 = arith.divf %103, %104 : vector<8x128xf32>
    %106 = vector.extract_strided_slice %87 {offsets = [0, 256], sizes = [8, 128], strides = [1, 1]} : vector<8x384xf32> to vector<8x128xf32>
    %107 = vector.extract_strided_slice %89 {offsets = [0, 256], sizes = [8, 128], strides = [1, 1]} : vector<8x384xf32> to vector<8x128xf32>
    %108 = vector.broadcast %9 : vector<1x128xf32> to vector<8x128xf32>
    %109 = arith.addf %107, %108 : vector<8x128xf32>
    %110 = arith.mulf %97, %109 : vector<8x128xf32>
    %111 = arith.addf %106, %110 : vector<8x128xf32>
    %112 = math.tanh %111 : vector<8x128xf32>
    %cst_39 = arith.constant 1.000000e+00 : f32
    %113 = vector.broadcast %cst_39 : f32 to vector<8x128xf32>
    %114 = arith.subf %113, %105 : vector<8x128xf32>
    %115 = arith.mulf %114, %112 : vector<8x128xf32>
    %116 = arith.mulf %105, %80 : vector<8x128xf32>
    %117 = arith.addf %115, %116 : vector<8x128xf32>
    %118 = arith.index_cast %c2_i32 : i32 to index
    %c0_40 = arith.constant 0 : index
    %c0_41 = arith.constant 0 : index
    %119 = vector.load %arg6[%118, %c0_40, %c0_41] : memref<8x8x128xf32, #tpu.memory_space<vmem>>, vector<1x8x128xf32>
    %120 = vector.shape_cast %119 : vector<1x8x128xf32> to vector<8x128xf32>
    %121 = vector.shape_cast %117 : vector<8x128xf32> to vector<1x8x128xf32>
    tpu.vector_store %arg6[%118, %c0_40, %c0_41], %121 {strides = array<i32>} : memref<8x8x128xf32, #tpu.memory_space<vmem>>, vector<1x8x128xf32>,
    %c3_i32 = arith.constant 3 : i32
    %122 = arith.index_cast %c3_i32 : i32 to index
    %c0_42 = arith.constant 0 : index
    %c0_43 = arith.constant 0 : index
    %123 = vector.load %arg8[%122, %c0_42, %c0_43] : memref<8x8x384xf32, #tpu.memory_space<vmem>>, vector<1x8x384xf32>
    %124 = vector.shape_cast %123 : vector<1x8x384xf32> to vector<8x384xf32>
    %c0_44 = arith.constant 0 : index
    %c0_45 = arith.constant 0 : index
    %125 = vector.load %arg4[%c0_44, %c0_45] : memref<128x384xf32, #tpu.memory_space<vmem>>, vector<128x384xf32>
    %cst_46 = arith.constant dense<0.000000e+00> : vector<8x384xf32>
    %126 = tpu.matmul %117, %125, %cst_46 {dimension_numbers = #tpu.dot_dimension_numbers<[1], [0], [0], [1], [0, 0, 1, 1], [], []>} : vector<8x128xf32>, vector<128x384xf32>, vector<8x384xf32> -> vector<8x384xf32>
    %127 = vector.extract_strided_slice %124 {offsets = [0, 0], sizes = [8, 128], strides = [1, 1]} : vector<8x384xf32> to vector<8x128xf32>
    %128 = vector.extract_strided_slice %126 {offsets = [0, 0], sizes = [8, 128], strides = [1, 1]} : vector<8x384xf32> to vector<8x128xf32>
    %129 = arith.addf %127, %128 : vector<8x128xf32>
    %130 = arith.negf %129 : vector<8x128xf32>
    %131 = math.exp %130 : vector<8x128xf32>
    %cst_47 = arith.constant 1.000000e+00 : f32
    %132 = vector.broadcast %cst_47 : f32 to vector<8x128xf32>
    %133 = arith.addf %132, %131 : vector<8x128xf32>
    %134 = arith.divf %132, %133 : vector<8x128xf32>
    %135 = vector.extract_strided_slice %124 {offsets = [0, 128], sizes = [8, 128], strides = [1, 1]} : vector<8x384xf32> to vector<8x128xf32>
    %136 = vector.extract_strided_slice %126 {offsets = [0, 128], sizes = [8, 128], strides = [1, 1]} : vector<8x384xf32> to vector<8x128xf32>
    %137 = arith.addf %135, %136 : vector<8x128xf32>
    %138 = arith.negf %137 : vector<8x128xf32>
    %139 = math.exp %138 : vector<8x128xf32>
    %cst_48 = arith.constant 1.000000e+00 : f32
    %140 = vector.broadcast %cst_48 : f32 to vector<8x128xf32>
    %141 = arith.addf %140, %139 : vector<8x128xf32>
    %142 = arith.divf %140, %141 : vector<8x128xf32>
    %143 = vector.extract_strided_slice %124 {offsets = [0, 256], sizes = [8, 128], strides = [1, 1]} : vector<8x384xf32> to vector<8x128xf32>
    %144 = vector.extract_strided_slice %126 {offsets = [0, 256], sizes = [8, 128], strides = [1, 1]} : vector<8x384xf32> to vector<8x128xf32>
    %145 = vector.broadcast %9 : vector<1x128xf32> to vector<8x128xf32>
    %146 = arith.addf %144, %145 : vector<8x128xf32>
    %147 = arith.mulf %134, %146 : vector<8x128xf32>
    %148 = arith.addf %143, %147 : vector<8x128xf32>
    %149 = math.tanh %148 : vector<8x128xf32>
    %cst_49 = arith.constant 1.000000e+00 : f32
    %150 = vector.broadcast %cst_49 : f32 to vector<8x128xf32>
    %151 = arith.subf %150, %142 : vector<8x128xf32>
    %152 = arith.mulf %151, %149 : vector<8x128xf32>
    %153 = arith.mulf %142, %117 : vector<8x128xf32>
    %154 = arith.addf %152, %153 : vector<8x128xf32>
    %155 = arith.index_cast %c3_i32 : i32 to index
    %c0_50 = arith.constant 0 : index
    %c0_51 = arith.constant 0 : index
    %156 = vector.load %arg6[%155, %c0_50, %c0_51] : memref<8x8x128xf32, #tpu.memory_space<vmem>>, vector<1x8x128xf32>
    %157 = vector.shape_cast %156 : vector<1x8x128xf32> to vector<8x128xf32>
    %158 = vector.shape_cast %154 : vector<8x128xf32> to vector<1x8x128xf32>
    tpu.vector_store %arg6[%155, %c0_50, %c0_51], %158 {strides = array<i32>} : memref<8x8x128xf32, #tpu.memory_space<vmem>>, vector<1x8x128xf32>,
    %c4_i32 = arith.constant 4 : i32
    %159 = arith.index_cast %c4_i32 : i32 to index
    %c0_52 = arith.constant 0 : index
    %c0_53 = arith.constant 0 : index
    %160 = vector.load %arg8[%159, %c0_52, %c0_53] : memref<8x8x384xf32, #tpu.memory_space<vmem>>, vector<1x8x384xf32>
    %161 = vector.shape_cast %160 : vector<1x8x384xf32> to vector<8x384xf32>
    %c0_54 = arith.constant 0 : index
    %c0_55 = arith.constant 0 : index
    %162 = vector.load %arg4[%c0_54, %c0_55] : memref<128x384xf32, #tpu.memory_space<vmem>>, vector<128x384xf32>
    %cst_56 = arith.constant dense<0.000000e+00> : vector<8x384xf32>
    %163 = tpu.matmul %154, %162, %cst_56 {dimension_numbers = #tpu.dot_dimension_numbers<[1], [0], [0], [1], [0, 0, 1, 1], [], []>} : vector<8x128xf32>, vector<128x384xf32>, vector<8x384xf32> -> vector<8x384xf32>
    %164 = vector.extract_strided_slice %161 {offsets = [0, 0], sizes = [8, 128], strides = [1, 1]} : vector<8x384xf32> to vector<8x128xf32>
    %165 = vector.extract_strided_slice %163 {offsets = [0, 0], sizes = [8, 128], strides = [1, 1]} : vector<8x384xf32> to vector<8x128xf32>
    %166 = arith.addf %164, %165 : vector<8x128xf32>
    %167 = arith.negf %166 : vector<8x128xf32>
    %168 = math.exp %167 : vector<8x128xf32>
    %cst_57 = arith.constant 1.000000e+00 : f32
    %169 = vector.broadcast %cst_57 : f32 to vector<8x128xf32>
    %170 = arith.addf %169, %168 : vector<8x128xf32>
    %171 = arith.divf %169, %170 : vector<8x128xf32>
    %172 = vector.extract_strided_slice %161 {offsets = [0, 128], sizes = [8, 128], strides = [1, 1]} : vector<8x384xf32> to vector<8x128xf32>
    %173 = vector.extract_strided_slice %163 {offsets = [0, 128], sizes = [8, 128], strides = [1, 1]} : vector<8x384xf32> to vector<8x128xf32>
    %174 = arith.addf %172, %173 : vector<8x128xf32>
    %175 = arith.negf %174 : vector<8x128xf32>
    %176 = math.exp %175 : vector<8x128xf32>
    %cst_58 = arith.constant 1.000000e+00 : f32
    %177 = vector.broadcast %cst_58 : f32 to vector<8x128xf32>
    %178 = arith.addf %177, %176 : vector<8x128xf32>
    %179 = arith.divf %177, %178 : vector<8x128xf32>
    %180 = vector.extract_strided_slice %161 {offsets = [0, 256], sizes = [8, 128], strides = [1, 1]} : vector<8x384xf32> to vector<8x128xf32>
    %181 = vector.extract_strided_slice %163 {offsets = [0, 256], sizes = [8, 128], strides = [1, 1]} : vector<8x384xf32> to vector<8x128xf32>
    %182 = vector.broadcast %9 : vector<1x128xf32> to vector<8x128xf32>
    %183 = arith.addf %181, %182 : vector<8x128xf32>
    %184 = arith.mulf %171, %183 : vector<8x128xf32>
    %185 = arith.addf %180, %184 : vector<8x128xf32>
    %186 = math.tanh %185 : vector<8x128xf32>
    %cst_59 = arith.constant 1.000000e+00 : f32
    %187 = vector.broadcast %cst_59 : f32 to vector<8x128xf32>
    %188 = arith.subf %187, %179 : vector<8x128xf32>
    %189 = arith.mulf %188, %186 : vector<8x128xf32>
    %190 = arith.mulf %179, %154 : vector<8x128xf32>
    %191 = arith.addf %189, %190 : vector<8x128xf32>
    %192 = arith.index_cast %c4_i32 : i32 to index
    %c0_60 = arith.constant 0 : index
    %c0_61 = arith.constant 0 : index
    %193 = vector.load %arg6[%192, %c0_60, %c0_61] : memref<8x8x128xf32, #tpu.memory_space<vmem>>, vector<1x8x128xf32>
    %194 = vector.shape_cast %193 : vector<1x8x128xf32> to vector<8x128xf32>
    %195 = vector.shape_cast %191 : vector<8x128xf32> to vector<1x8x128xf32>
    tpu.vector_store %arg6[%192, %c0_60, %c0_61], %195 {strides = array<i32>} : memref<8x8x128xf32, #tpu.memory_space<vmem>>, vector<1x8x128xf32>,
    %c5_i32 = arith.constant 5 : i32
    %196 = arith.index_cast %c5_i32 : i32 to index
    %c0_62 = arith.constant 0 : index
    %c0_63 = arith.constant 0 : index
    %197 = vector.load %arg8[%196, %c0_62, %c0_63] : memref<8x8x384xf32, #tpu.memory_space<vmem>>, vector<1x8x384xf32>
    %198 = vector.shape_cast %197 : vector<1x8x384xf32> to vector<8x384xf32>
    %c0_64 = arith.constant 0 : index
    %c0_65 = arith.constant 0 : index
    %199 = vector.load %arg4[%c0_64, %c0_65] : memref<128x384xf32, #tpu.memory_space<vmem>>, vector<128x384xf32>
    %cst_66 = arith.constant dense<0.000000e+00> : vector<8x384xf32>
    %200 = tpu.matmul %191, %199, %cst_66 {dimension_numbers = #tpu.dot_dimension_numbers<[1], [0], [0], [1], [0, 0, 1, 1], [], []>} : vector<8x128xf32>, vector<128x384xf32>, vector<8x384xf32> -> vector<8x384xf32>
    %201 = vector.extract_strided_slice %198 {offsets = [0, 0], sizes = [8, 128], strides = [1, 1]} : vector<8x384xf32> to vector<8x128xf32>
    %202 = vector.extract_strided_slice %200 {offsets = [0, 0], sizes = [8, 128], strides = [1, 1]} : vector<8x384xf32> to vector<8x128xf32>
    %203 = arith.addf %201, %202 : vector<8x128xf32>
    %204 = arith.negf %203 : vector<8x128xf32>
    %205 = math.exp %204 : vector<8x128xf32>
    %cst_67 = arith.constant 1.000000e+00 : f32
    %206 = vector.broadcast %cst_67 : f32 to vector<8x128xf32>
    %207 = arith.addf %206, %205 : vector<8x128xf32>
    %208 = arith.divf %206, %207 : vector<8x128xf32>
    %209 = vector.extract_strided_slice %198 {offsets = [0, 128], sizes = [8, 128], strides = [1, 1]} : vector<8x384xf32> to vector<8x128xf32>
    %210 = vector.extract_strided_slice %200 {offsets = [0, 128], sizes = [8, 128], strides = [1, 1]} : vector<8x384xf32> to vector<8x128xf32>
    %211 = arith.addf %209, %210 : vector<8x128xf32>
    %212 = arith.negf %211 : vector<8x128xf32>
    %213 = math.exp %212 : vector<8x128xf32>
    %cst_68 = arith.constant 1.000000e+00 : f32
    %214 = vector.broadcast %cst_68 : f32 to vector<8x128xf32>
    %215 = arith.addf %214, %213 : vector<8x128xf32>
    %216 = arith.divf %214, %215 : vector<8x128xf32>
    %217 = vector.extract_strided_slice %198 {offsets = [0, 256], sizes = [8, 128], strides = [1, 1]} : vector<8x384xf32> to vector<8x128xf32>
    %218 = vector.extract_strided_slice %200 {offsets = [0, 256], sizes = [8, 128], strides = [1, 1]} : vector<8x384xf32> to vector<8x128xf32>
    %219 = vector.broadcast %9 : vector<1x128xf32> to vector<8x128xf32>
    %220 = arith.addf %218, %219 : vector<8x128xf32>
    %221 = arith.mulf %208, %220 : vector<8x128xf32>
    %222 = arith.addf %217, %221 : vector<8x128xf32>
    %223 = math.tanh %222 : vector<8x128xf32>
    %cst_69 = arith.constant 1.000000e+00 : f32
    %224 = vector.broadcast %cst_69 : f32 to vector<8x128xf32>
    %225 = arith.subf %224, %216 : vector<8x128xf32>
    %226 = arith.mulf %225, %223 : vector<8x128xf32>
    %227 = arith.mulf %216, %191 : vector<8x128xf32>
    %228 = arith.addf %226, %227 : vector<8x128xf32>
    %229 = arith.index_cast %c5_i32 : i32 to index
    %c0_70 = arith.constant 0 : index
    %c0_71 = arith.constant 0 : index
    %230 = vector.load %arg6[%229, %c0_70, %c0_71] : memref<8x8x128xf32, #tpu.memory_space<vmem>>, vector<1x8x128xf32>
    %231 = vector.shape_cast %230 : vector<1x8x128xf32> to vector<8x128xf32>
    %232 = vector.shape_cast %228 : vector<8x128xf32> to vector<1x8x128xf32>
    tpu.vector_store %arg6[%229, %c0_70, %c0_71], %232 {strides = array<i32>} : memref<8x8x128xf32, #tpu.memory_space<vmem>>, vector<1x8x128xf32>,
    %c6_i32 = arith.constant 6 : i32
    %233 = arith.index_cast %c6_i32 : i32 to index
    %c0_72 = arith.constant 0 : index
    %c0_73 = arith.constant 0 : index
    %234 = vector.load %arg8[%233, %c0_72, %c0_73] : memref<8x8x384xf32, #tpu.memory_space<vmem>>, vector<1x8x384xf32>
    %235 = vector.shape_cast %234 : vector<1x8x384xf32> to vector<8x384xf32>
    %c0_74 = arith.constant 0 : index
    %c0_75 = arith.constant 0 : index
    %236 = vector.load %arg4[%c0_74, %c0_75] : memref<128x384xf32, #tpu.memory_space<vmem>>, vector<128x384xf32>
    %cst_76 = arith.constant dense<0.000000e+00> : vector<8x384xf32>
    %237 = tpu.matmul %228, %236, %cst_76 {dimension_numbers = #tpu.dot_dimension_numbers<[1], [0], [0], [1], [0, 0, 1, 1], [], []>} : vector<8x128xf32>, vector<128x384xf32>, vector<8x384xf32> -> vector<8x384xf32>
    %238 = vector.extract_strided_slice %235 {offsets = [0, 0], sizes = [8, 128], strides = [1, 1]} : vector<8x384xf32> to vector<8x128xf32>
    %239 = vector.extract_strided_slice %237 {offsets = [0, 0], sizes = [8, 128], strides = [1, 1]} : vector<8x384xf32> to vector<8x128xf32>
    %240 = arith.addf %238, %239 : vector<8x128xf32>
    %241 = arith.negf %240 : vector<8x128xf32>
    %242 = math.exp %241 : vector<8x128xf32>
    %cst_77 = arith.constant 1.000000e+00 : f32
    %243 = vector.broadcast %cst_77 : f32 to vector<8x128xf32>
    %244 = arith.addf %243, %242 : vector<8x128xf32>
    %245 = arith.divf %243, %244 : vector<8x128xf32>
    %246 = vector.extract_strided_slice %235 {offsets = [0, 128], sizes = [8, 128], strides = [1, 1]} : vector<8x384xf32> to vector<8x128xf32>
    %247 = vector.extract_strided_slice %237 {offsets = [0, 128], sizes = [8, 128], strides = [1, 1]} : vector<8x384xf32> to vector<8x128xf32>
    %248 = arith.addf %246, %247 : vector<8x128xf32>
    %249 = arith.negf %248 : vector<8x128xf32>
    %250 = math.exp %249 : vector<8x128xf32>
    %cst_78 = arith.constant 1.000000e+00 : f32
    %251 = vector.broadcast %cst_78 : f32 to vector<8x128xf32>
    %252 = arith.addf %251, %250 : vector<8x128xf32>
    %253 = arith.divf %251, %252 : vector<8x128xf32>
    %254 = vector.extract_strided_slice %235 {offsets = [0, 256], sizes = [8, 128], strides = [1, 1]} : vector<8x384xf32> to vector<8x128xf32>
    %255 = vector.extract_strided_slice %237 {offsets = [0, 256], sizes = [8, 128], strides = [1, 1]} : vector<8x384xf32> to vector<8x128xf32>
    %256 = vector.broadcast %9 : vector<1x128xf32> to vector<8x128xf32>
    %257 = arith.addf %255, %256 : vector<8x128xf32>
    %258 = arith.mulf %245, %257 : vector<8x128xf32>
    %259 = arith.addf %254, %258 : vector<8x128xf32>
    %260 = math.tanh %259 : vector<8x128xf32>
    %cst_79 = arith.constant 1.000000e+00 : f32
    %261 = vector.broadcast %cst_79 : f32 to vector<8x128xf32>
    %262 = arith.subf %261, %253 : vector<8x128xf32>
    %263 = arith.mulf %262, %260 : vector<8x128xf32>
    %264 = arith.mulf %253, %228 : vector<8x128xf32>
    %265 = arith.addf %263, %264 : vector<8x128xf32>
    %266 = arith.index_cast %c6_i32 : i32 to index
    %c0_80 = arith.constant 0 : index
    %c0_81 = arith.constant 0 : index
    %267 = vector.load %arg6[%266, %c0_80, %c0_81] : memref<8x8x128xf32, #tpu.memory_space<vmem>>, vector<1x8x128xf32>
    %268 = vector.shape_cast %267 : vector<1x8x128xf32> to vector<8x128xf32>
    %269 = vector.shape_cast %265 : vector<8x128xf32> to vector<1x8x128xf32>
    tpu.vector_store %arg6[%266, %c0_80, %c0_81], %269 {strides = array<i32>} : memref<8x8x128xf32, #tpu.memory_space<vmem>>, vector<1x8x128xf32>,
    %c7_i32 = arith.constant 7 : i32
    %270 = arith.index_cast %c7_i32 : i32 to index
    %c0_82 = arith.constant 0 : index
    %c0_83 = arith.constant 0 : index
    %271 = vector.load %arg8[%270, %c0_82, %c0_83] : memref<8x8x384xf32, #tpu.memory_space<vmem>>, vector<1x8x384xf32>
    %272 = vector.shape_cast %271 : vector<1x8x384xf32> to vector<8x384xf32>
    %c0_84 = arith.constant 0 : index
    %c0_85 = arith.constant 0 : index
    %273 = vector.load %arg4[%c0_84, %c0_85] : memref<128x384xf32, #tpu.memory_space<vmem>>, vector<128x384xf32>
    %cst_86 = arith.constant dense<0.000000e+00> : vector<8x384xf32>
    %274 = tpu.matmul %265, %273, %cst_86 {dimension_numbers = #tpu.dot_dimension_numbers<[1], [0], [0], [1], [0, 0, 1, 1], [], []>} : vector<8x128xf32>, vector<128x384xf32>, vector<8x384xf32> -> vector<8x384xf32>
    %275 = vector.extract_strided_slice %272 {offsets = [0, 0], sizes = [8, 128], strides = [1, 1]} : vector<8x384xf32> to vector<8x128xf32>
    %276 = vector.extract_strided_slice %274 {offsets = [0, 0], sizes = [8, 128], strides = [1, 1]} : vector<8x384xf32> to vector<8x128xf32>
    %277 = arith.addf %275, %276 : vector<8x128xf32>
    %278 = arith.negf %277 : vector<8x128xf32>
    %279 = math.exp %278 : vector<8x128xf32>
    %cst_87 = arith.constant 1.000000e+00 : f32
    %280 = vector.broadcast %cst_87 : f32 to vector<8x128xf32>
    %281 = arith.addf %280, %279 : vector<8x128xf32>
    %282 = arith.divf %280, %281 : vector<8x128xf32>
    %283 = vector.extract_strided_slice %272 {offsets = [0, 128], sizes = [8, 128], strides = [1, 1]} : vector<8x384xf32> to vector<8x128xf32>
    %284 = vector.extract_strided_slice %274 {offsets = [0, 128], sizes = [8, 128], strides = [1, 1]} : vector<8x384xf32> to vector<8x128xf32>
    %285 = arith.addf %283, %284 : vector<8x128xf32>
    %286 = arith.negf %285 : vector<8x128xf32>
    %287 = math.exp %286 : vector<8x128xf32>
    %cst_88 = arith.constant 1.000000e+00 : f32
    %288 = vector.broadcast %cst_88 : f32 to vector<8x128xf32>
    %289 = arith.addf %288, %287 : vector<8x128xf32>
    %290 = arith.divf %288, %289 : vector<8x128xf32>
    %291 = vector.extract_strided_slice %272 {offsets = [0, 256], sizes = [8, 128], strides = [1, 1]} : vector<8x384xf32> to vector<8x128xf32>
    %292 = vector.extract_strided_slice %274 {offsets = [0, 256], sizes = [8, 128], strides = [1, 1]} : vector<8x384xf32> to vector<8x128xf32>
    %293 = vector.broadcast %9 : vector<1x128xf32> to vector<8x128xf32>
    %294 = arith.addf %292, %293 : vector<8x128xf32>
    %295 = arith.mulf %282, %294 : vector<8x128xf32>
    %296 = arith.addf %291, %295 : vector<8x128xf32>
    %297 = math.tanh %296 : vector<8x128xf32>
    %cst_89 = arith.constant 1.000000e+00 : f32
    %298 = vector.broadcast %cst_89 : f32 to vector<8x128xf32>
    %299 = arith.subf %298, %290 : vector<8x128xf32>
    %300 = arith.mulf %299, %297 : vector<8x128xf32>
    %301 = arith.mulf %290, %265 : vector<8x128xf32>
    %302 = arith.addf %300, %301 : vector<8x128xf32>
    %303 = arith.index_cast %c7_i32 : i32 to index
    %c0_90 = arith.constant 0 : index
    %c0_91 = arith.constant 0 : index
    %304 = vector.load %arg6[%303, %c0_90, %c0_91] : memref<8x8x128xf32, #tpu.memory_space<vmem>>, vector<1x8x128xf32>
    %305 = vector.shape_cast %304 : vector<1x8x128xf32> to vector<8x128xf32>
    %306 = vector.shape_cast %302 : vector<8x128xf32> to vector<1x8x128xf32>
    tpu.vector_store %arg6[%303, %c0_90, %c0_91], %306 {strides = array<i32>} : memref<8x8x128xf32, #tpu.memory_space<vmem>>, vector<1x8x128xf32>,
    %c8_i32 = arith.constant 8 : i32
    %c0_92 = arith.constant 0 : index
    %c0_93 = arith.constant 0 : index
    %307 = vector.load %arg7[%c0_92, %c0_93] : memref<8x128xf32, #tpu.memory_space<vmem>>, vector<8x128xf32>
    tpu.vector_store %arg7[%c0_92, %c0_93], %302 {strides = array<i32>} : memref<8x128xf32, #tpu.memory_space<vmem>>, vector<8x128xf32>,
    return
  }
  func.func @transform_0(%arg0: i32) -> (i32, i32, i32) {
    %c0_i32 = arith.constant 0 : i32
    %c0_i32_0 = arith.constant 0 : i32
    %c0_i32_1 = arith.constant 0 : i32
    %c0_i32_2 = arith.constant 0 : i32
    return %c0_i32, %c0_i32_0, %c0_i32_1 : i32, i32, i32
  }
  func.func @transform_1(%arg0: i32) -> (i32, i32) {
    %c0_i32 = arith.constant 0 : i32
    %c0_i32_0 = arith.constant 0 : i32
    %c0_i32_1 = arith.constant 0 : i32
    return %c0_i32, %c0_i32_0 : i32, i32
  }
  func.func @transform_2(%arg0: i32) -> (i32, i32) {
    %c0_i32 = arith.constant 0 : i32
    %c0_i32_0 = arith.constant 0 : i32
    %c0_i32_1 = arith.constant 0 : i32
    return %c0_i32, %c0_i32_0 : i32, i32
  }
  func.func @transform_3(%arg0: i32) -> (i32, i32) {
    %c0_i32 = arith.constant 0 : i32
    %c0_i32_0 = arith.constant 0 : i32
    %c0_i32_1 = arith.constant 0 : i32
    return %c0_i32, %c0_i32_0 : i32, i32
  }
  func.func @transform_4(%arg0: i32) -> (i32, i32) {
    %c0_i32 = arith.constant 0 : i32
    %c0_i32_0 = arith.constant 0 : i32
    %c0_i32_1 = arith.constant 0 : i32
    return %c0_i32, %c0_i32_0 : i32, i32
  }
  func.func @transform_5(%arg0: i32) -> (i32, i32, i32) {
    %c0_i32 = arith.constant 0 : i32
    %c0_i32_0 = arith.constant 0 : i32
    %c0_i32_1 = arith.constant 0 : i32
    %c0_i32_2 = arith.constant 0 : i32
    return %c0_i32, %c0_i32_0, %c0_i32_1 : i32, i32, i32
  }
  func.func @transform_6(%arg0: i32) -> (i32, i32) {
    %c0_i32 = arith.constant 0 : i32
    %c0_i32_0 = arith.constant 0 : i32
    %c0_i32_1 = arith.constant 0 : i32
    return %c0_i32, %c0_i32_0 : i32, i32
  }
}

</mosaic_0001>

<bundles_post_ra>
// kernel: gru_forward.1
= control target key start
LH: loop header
LB: loop body
LE: loop exit
PB: predicated region body
PF: predicated region fallthrough
CT: control target
= control target key end

     0   :  { %12 = vsyncpa [#allocation4], 0  ;;  %s3892_s0 = inlined_call_operand.vmem [shape: f32[8,8,128], index: 0, kind: input, shape index: {}]   ;;  %s3893_s1 = inlined_call_operand.hbm [shape: f32[128,384], index: 1, kind: input, shape index: {}]   ;;  %s3894_s2 = inlined_call_operand.vmem [shape: f32[1,384], index: 2, kind: input, shape index: {}]   ;;  %s3895_s3 = inlined_call_operand.hbm [shape: f32[128,384], index: 3, kind: input, shape index: {}]   ;;  %s3896_s4 = inlined_call_operand.vmem [shape: f32[1,128], index: 4, kind: input, shape index: {}]   ;;  %s3897_s5 = inlined_call_operand.vmem [shape: f32[8,8,128], index: 5, kind: output, shape index: {0}]   ;;  %s3898_s6 = inlined_call_operand.vmem [shape: f32[8,128], index: 6, kind: output, shape index: {1}]  }
   0x1   :  { %13 = vsyncpa [#allocation6], 0  ;;  %s3304_s21 = smov [#allocation3]   ;;  %s3256_s25 = scalar_lea.hbm %s3893_s1, 6144 }
   0x2   :  { %s21_s22 = sshll.u32 %s3304_s21, 4  ;;  %p3257_p0 = scmp.ne.s32.totalorder %s3893_s1, %s3256_s25  ;;  %s22_s22 = int_to_ptr.vmem [resolvable:$true] %s21_s22 }
   0x3   :  { %p3260_p1 = scmp.lt.u32.totalorder %s3256_s25, %s3893_s1 }
   0x5   :  { %p3262_p2 = pnand %p3260_p1, %p3257_p0 }
   0x7   :  { %3265 = shalt.err (!%p3262_p2)
}
   0x8   :  { %s3266_s30 = scalar_lea.vmem %s22_s22, 6144  ;;  %p3271_p4 = scmp.lt.s32.totalorder %s22_s22, %s22_s22 }
   0x9   :  { %p3267_p3 = scmp.ne.s32.totalorder %s22_s22, %s3266_s30  ;;  %p3272_p5 = scmp.lt.s32.totalorder %s3266_s30, %s3266_s30 }
   0xb   :  { %p3273_p6 = por %p3272_p5, %p3271_p4 }
   0xd   :  { %p3274_p7 = pnand %p3273_p6, %p3267_p3 }
   0xf   :  { %3277 = shalt.err (!%p3274_p7)
}
  0x10   :  { %s3305_s7 = smov 384   ;;  %s3306_s8 = smov 24  }
  0x11   :  { %27 = dma.hbm_to_vmem [thread:$0]  %s3893_s1, 6144, %s22_s22, [#allocation4], %s3305_s7, %s3305_s7, %s3306_s8  }
  0x12   :  { %s3307_s11 = smov [#allocation5]   ;;  %s3278_s15 = scalar_lea.hbm %s3895_s3, 6144 }
  0x13   :  { %s35_s12 = sshll.u32 %s3307_s11, 4  ;;  %p3279_p8 = scmp.ne.s32.totalorder %s3895_s3, %s3278_s15  ;;  %s36_s12 = int_to_ptr.vmem [resolvable:$true] %s35_s12 }
  0x14   :  { %p3282_p9 = scmp.lt.u32.totalorder %s3278_s15, %s3895_s3 }
  0x16   :  { %p3284_p10 = pnand %p3282_p9, %p3279_p8 }
  0x18   :  { %3287 = shalt.err (!%p3284_p10)
}
  0x19   :  { %s3288_s20 = scalar_lea.vmem %s36_s12, 6144  ;;  %p3293_p12 = scmp.lt.s32.totalorder %s36_s12, %s36_s12 }
  0x1a   :  { %p3289_p11 = scmp.ne.s32.totalorder %s36_s12, %s3288_s20  ;;  %p3294_p13 = scmp.lt.s32.totalorder %s3288_s20, %s3288_s20 }
  0x1c   :  { %p3295_p0 = por %p3294_p13, %p3293_p12 }
  0x1e   :  { %p3296_p1 = pnand %p3295_p0, %p3289_p11 }
  0x20   :  { %3299 = shalt.err (!%p3296_p1)
}
  0x21   :  { %41 = dma.hbm_to_vmem [thread:$0]  %s3895_s3, 6144, %s36_s12, [#allocation6], %s3305_s7, %s3305_s7, %s3306_s8  }
  0x22   :  { %3300 = dma.done.wait [#allocation4], 6144  }
  0x23   :  { %3301 = vsyncadd [#allocation4], 4294961152 }
  0x24   :  { %3302 = dma.done.wait [#allocation6], 6144  }
  0x25   :  { %3303 = vsyncadd [#allocation6], 4294961152  ;;  %v3308_v0 = vmov 0.0   ;;  %v59_v1 = vld [vmem:[#allocation3 + $0x8] sm:$0xff]  ;;  %v62_v2 = vld [vmem:[#allocation3 + $0x20] sm:$0xff]  ;;  %vm3310_vm0 = vmmov 0  }
  0x26   :  { %187 = vmatprep.mubr.f32.mxu0 %v3308_v0  ;;  %v58_v3 = vld [vmem:[#allocation3] sm:$0xff]  ;;  %v2625_v4 = vpack.c.bf16 %v62_v2, %v59_v1  ;;  %v61_v5 = vld [vmem:[#allocation3 + $0x18] sm:$0xff]  ;;  %v68_v7 = vld [vmem:[#allocation3 + $0x50] sm:$0xff] }
  0x27   :  { %v65_v6 = vld [vmem:[#allocation3 + $0x38] sm:$0xff]  ;;  %v2627_v8 = vpack.c.bf16 %v61_v5, %v58_v3  ;;  %v64_v10 = vld [vmem:[#allocation3 + $0x30] sm:$0xff]  ;;  %v67_v11 = vld [vmem:[#allocation3 + $0x48] sm:$0xff] }
  0x28   :  { %v2629_v9 = vpack.c.bf16 %v68_v7, %v65_v6  ;;  %v71_v12 = vld [vmem:[#allocation3 + $0x68] sm:$0xff]  ;;  %2626 = vmatprep.subr.bf16.mxu0 %v2625_v4  ;;  %v74_v13 = vld [vmem:[#allocation3 + $0x80] sm:$0xff]  ;;  %v2631_v14 = vpack.c.bf16 %v67_v11, %v64_v10  ;;  %v73_v17 = vld [vmem:[#allocation3 + $0x78] sm:$0xff] }
  0x29   :  { %2628 = vmatpush1.bf16.msra.mxu0 %v2627_v8  ;;  %v2633_v15 = vpack.c.bf16 %v74_v13, %v71_v12  ;;  %v70_v16 = vld [vmem:[#allocation3 + $0x60] sm:$0xff]  ;;  %v77_v18 = vld [vmem:[#allocation3 + $0x98] sm:$0xff]  ;;  %v80_v19 = vld [vmem:[#allocation3 + $0xb0] sm:$0xff] }
  0x2a   :  { %2630 = vmatprep.subr.bf16.mxu0 %v2629_v9  ;;  %v2635_v20 = vpack.c.bf16 %v73_v17, %v70_v16  ;;  %v76_v21 = vld [vmem:[#allocation3 + $0x90] sm:$0xff]  ;;  %v2637_v22 = vpack.c.bf16 %v80_v19, %v77_v18  ;;  %v79_v23 = vld [vmem:[#allocation3 + $0xa8] sm:$0xff]  ;;  %v86_v27 = vld [vmem:[#allocation3 + $0xe0] sm:$0xff] }
  0x2b   :  { %v60_v24 = vld [vmem:[#allocation3 + $0x10] sm:$0xff]  ;;  %v63_v25 = vld [vmem:[#allocation3 + $0x28] sm:$0xff]  ;;  %v66_v29 = vld [vmem:[#allocation3 + $0x40] sm:$0xff]  ;;  %v2639_v31 = vpack.c.bf16 %v79_v23, %v76_v21 }
  0x2c   :  { %v83_v26 = vld [vmem:[#allocation3 + $0xc8] sm:$0xff]  ;;  %v2657_v28 = vpack.c.bf16 %v63_v25, %v60_v24  ;;  %v69_v30 = vld [vmem:[#allocation3 + $0x58] sm:$0xff]  ;;  %v82_v32 = vld [vmem:[#allocation3 + $0xc0] sm:$0xff] }
  0x2d   :  { %2632 = vmatpush1.bf16.msra.mxu0 %v2631_v14  ;;  %v2661_v33 = vpack.c.bf16 %v69_v30, %v66_v29  ;;  %v2641_v34 = vpack.c.bf16 %v86_v27, %v83_v26  ;;  %v85_v35 = vld [vmem:[#allocation3 + $0xd8] sm:$0xff]  ;;  %v3374_v36 = vld [vmem:[%s3892_s0] sm:$0xff]  ;;  %v72_v37 = vld [vmem:[#allocation3 + $0x70] sm:$0xff] }
  0x2e   :  { %2634 = vmatprep.subr.bf16.mxu0 %v2633_v15  ;;  %2658 = vmatprep.subr.bf16.mxu1 %v2657_v28  ;;  %v89_v38 = vld [vmem:[#allocation3 + $0xf8] sm:$0xff]  ;;  %v92_v39 = vld [vmem:[#allocation3 + $0x110] sm:$0xff]  ;;  %v75_v40 = vld [vmem:[#allocation3 + $0x88] sm:$0xff]  ;;  %v2643_v42 = vpack.c.bf16 %v85_v35, %v82_v32 }
  0x2f   :  { %2660 = vmatpush3.bf16.msra.mxu1 %v2657_v28  ;;  %2333 = vmatprep.mubr.f32.mxu1 %v3374_v36  ;;  %v2665_v41 = vpack.c.bf16 %v75_v40, %v72_v37  ;;  %v78_v43 = vld [vmem:[#allocation3 + $0xa0] sm:$0xff]  ;;  %v81_v44 = vld [vmem:[#allocation3 + $0xb8] sm:$0xff]  ;;  %v2645_v45 = vpack.c.bf16 %v92_v39, %v89_v38  ;;  %v88_v46 = vld [vmem:[#allocation3 + $0xf0] sm:$0xff]  ;;  %v3309_v40 = vmov 0.0|0.0  }
  0x30   :  { %2662 = vmatprep.subr.bf16.mxu1 %v2661_v33  ;;  %v91_v47 = vld [vmem:[#allocation3 + $0x108] sm:$0xff]  ;;  %v98_v49 = vld [vmem:[#allocation3 + $0x140] sm:$0xff]  ;;  %v2669_v50 = vpack.c.bf16 %v81_v44, %v78_v43  ;;  %v84_v51 = vld [vmem:[#allocation3 + $0xd0] sm:$0xff] }
  0x31   :  { %2636 = vmatpush1.bf16.msra.mxu0 %v2635_v20  ;;  %v95_v48 = vld [vmem:[#allocation3 + $0x128] sm:$0xff]  ;;  %v2647_v53 = vpack.c.bf16 %v91_v47, %v88_v46  ;;  %v94_v55 = vld [vmem:[#allocation3 + $0x120] sm:$0xff]  ;;  %v97_v56 = vld [vmem:[#allocation3 + $0x138] sm:$0xff] }
  0x32   :  { %2638 = vmatprep.subr.bf16.mxu0 %v2637_v22  ;;  %v87_v52 = vld [vmem:[#allocation3 + $0xe8] sm:$0xff]  ;;  %v2649_v54 = vpack.c.bf16 %v98_v49, %v95_v48  ;;  %v101_v57 = vld [vmem:[#allocation3 + $0x158] sm:$0xff]  ;;  %v104_v58 = vld [vmem:[#allocation3 + $0x170] sm:$0xff]  ;;  %v2651_v62 = vpack.c.bf16 %v97_v56, %v94_v55 }
  0x33   :  { %2664 = vmatpush3.bf16.msra.mxu1 %v2661_v33  ;;  %v2673_v59 = vpack.c.bf16 %v87_v52, %v84_v51  ;;  %v90_v60 = vld [vmem:[#allocation3 + $0x100] sm:$0xff]  ;;  %v93_v61 = vld [vmem:[#allocation3 + $0x118] sm:$0xff]  ;;  %v2653_v63 = vpack.c.bf16 %v104_v58, %v101_v57  ;;  %v100_v1 = vld [vmem:[#allocation3 + $0x150] sm:$0xff] }
  0x34   :  { %2666 = vmatprep.subr.bf16.mxu1 %v2665_v41  ;;  %v103_v2 = vld [vmem:[#allocation3 + $0x168] sm:$0xff]  ;;  %v373_v4 = vld [vmem:[#allocation5 + $0x20] sm:$0xff]  ;;  %v2677_v5 = vpack.c.bf16 %v93_v61, %v90_v60  ;;  %v96_v6 = vld [vmem:[#allocation3 + $0x130] sm:$0xff] }
  0x35   :  { %2640 = vmatpush1.bf16.msra.mxu0 %v2639_v31  ;;  %v370_v3 = vld [vmem:[#allocation5 + $0x8] sm:$0xff]  ;;  %v2655_v8 = vpack.c.bf16 %v103_v2, %v100_v1  ;;  %v369_v10 = vld [vmem:[#allocation5] sm:$0xff]  ;;  %v372_v11 = vld [vmem:[#allocation5 + $0x18] sm:$0xff] }
  0x36   :  { %2642 = vmatprep.subr.bf16.mxu0 %v2641_v34  ;;  %v99_v7 = vld [vmem:[#allocation3 + $0x148] sm:$0xff]  ;;  %v3377_v9 = vpack.c.bf16 %v373_v4, %v370_v3  ;;  %v376_v12 = vld [vmem:[#allocation5 + $0x38] sm:$0xff]  ;;  %v379_v13 = vld [vmem:[#allocation5 + $0x50] sm:$0xff]  ;;  %v3379_v17 = vpack.c.bf16 %v372_v11, %v369_v10 }
  0x37   :  { %2668 = vmatpush3.bf16.msra.mxu1 %v2665_v41  ;;  %v2681_v14 = vpack.c.bf16 %v99_v7, %v96_v6  ;;  %v102_v15 = vld [vmem:[#allocation3 + $0x160] sm:$0xff]  ;;  %v105_v16 = vld [vmem:[#allocation3 + $0x178] sm:$0xff]  ;;  %v3382_v18 = vpack.c.bf16 %v379_v13, %v376_v12  ;;  %v375_v19 = vld [vmem:[#allocation5 + $0x30] sm:$0xff] }
  0x38   :  { %2670 = vmatprep.subr.bf16.mxu1 %v2669_v50  ;;  %v378_v20 = vld [vmem:[#allocation5 + $0x48] sm:$0xff]  ;;  %v385_v22 = vld [vmem:[#allocation5 + $0x80] sm:$0xff]  ;;  %v2685_v23 = vpack.c.bf16 %v105_v16, %v102_v15  ;;  %v384_v28 = vld [vmem:[#allocation5 + $0x78] sm:$0xff] }
  0x39   :  { %2644 = vmatpush1.bf16.msra.mxu0 %v2643_v42  ;;  %v382_v21 = vld [vmem:[#allocation5 + $0x68] sm:$0xff]  ;;  %v3390_v25 = vpack.c.bf16 %v378_v20, %v375_v19  ;;  %v381_v27 = vld [vmem:[#allocation5 + $0x60] sm:$0xff]  ;;  %v388_v29 = vld [vmem:[#allocation5 + $0x98] sm:$0xff] }
  0x3a   :  { %2646 = vmatprep.subr.bf16.mxu0 %v2645_v45  ;;  %v51_v24 = vld [vmem:[%s3892_s0 + $0x8] sm:$0xff]  ;;  %v3393_v26 = vpack.c.bf16 %v385_v22, %v382_v21  ;;  %v391_v30 = vld [vmem:[#allocation5 + $0xb0] sm:$0xff]  ;;  %v3400_v34 = vpack.c.bf16 %v384_v28, %v381_v27  ;;  %v397_v39 = vld [vmem:[#allocation5 + $0xe0] sm:$0xff] }
  0x3b   :  { %2672 = vmatpush3.bf16.msra.mxu1 %v2669_v50  ;;  %v371_v31 = vld [vmem:[#allocation5 + $0x10] sm:$0xff]  ;;  %v374_v32 = vld [vmem:[#allocation5 + $0x28] sm:$0xff]  ;;  %v3403_v35 = vpack.c.bf16 %v391_v30, %v388_v29  ;;  %v377_v42 = vld [vmem:[#allocation5 + $0x40] sm:$0xff] }
  0x3c   :  { %2674 = vmatprep.subr.bf16.mxu1 %v2673_v59  ;;  %v52_v33 = vld [vmem:[%s3892_s0 + $0x10] sm:$0xff]  ;;  %v390_v37 = vld [vmem:[#allocation5 + $0xa8] sm:$0xff]  ;;  %v3406_v41 = vpack.c.bf16 %v374_v32, %v371_v31  ;;  %v380_v43 = vld [vmem:[#allocation5 + $0x58] sm:$0xff] }
  0x3d   :  { %2648 = vmatpush1.bf16.msra.mxu0 %v2647_v53  ;;  %v394_v38 = vld [vmem:[#allocation5 + $0xc8] sm:$0xff]  ;;  %v53_v44 = vld [vmem:[%s3892_s0 + $0x18] sm:$0xff]  ;;  %v393_v47 = vld [vmem:[#allocation5 + $0xc0] sm:$0xff]  ;;  %v3419_v51 = vpack.c.bf16 %v380_v43, %v377_v42 }
  0x3e   :  { %2650 = vmatprep.subr.bf16.mxu0 %v2649_v54  ;;  %v3416_v46 = vpack.c.bf16 %v397_v39, %v394_v38  ;;  %v396_v48 = vld [vmem:[#allocation5 + $0xd8] sm:$0xff]  ;;  %v403_v50 = vld [vmem:[#allocation5 + $0x110] sm:$0xff]  ;;  %v386_v53 = vld [vmem:[#allocation5 + $0x88] sm:$0xff] }
  0x3f   :  { %2676 = vmatpush3.bf16.msra.mxu1 %v2673_v59  ;;  %v400_v49 = vld [vmem:[#allocation5 + $0xf8] sm:$0xff]  ;;  %v383_v52 = vld [vmem:[#allocation5 + $0x70] sm:$0xff]  ;;  %v54_v54 = vld [vmem:[%s3892_s0 + $0x20] sm:$0xff]  ;;  %v3427_v55 = vpack.c.bf16 %v396_v48, %v393_v47 }
  0x40   :  { %2678 = vmatprep.subr.bf16.mxu1 %v2677_v5  ;;  %v3430_v56 = vpack.c.bf16 %v403_v50, %v400_v49  ;;  %v399_v57 = vld [vmem:[#allocation5 + $0xf0] sm:$0xff]  ;;  %v402_v58 = vld [vmem:[#allocation5 + $0x108] sm:$0xff]  ;;  %v409_v60 = vld [vmem:[#allocation5 + $0x140] sm:$0xff]  ;;  %v3433_v61 = vpack.c.bf16 %v386_v53, %v383_v52 }
  0x41   :  { %2652 = vmatpush1.bf16.msra.mxu0 %v2651_v62  ;;  %v406_v59 = vld [vmem:[#allocation5 + $0x128] sm:$0xff]  ;;  %v389_v62 = vld [vmem:[#allocation5 + $0xa0] sm:$0xff]  ;;  %v3441_v2 = vpack.c.bf16 %v402_v58, %v399_v57  ;;  %v56_v3 = vld [vmem:[%s3892_s0 + $0x30] sm:$0xff] }
  0x42   :  { %2654 = vmatprep.subr.bf16.mxu0 %v2653_v63  ;;  %v392_v63 = vld [vmem:[#allocation5 + $0xb8] sm:$0xff]  ;;  %v55_v1 = vld [vmem:[%s3892_s0 + $0x28] sm:$0xff]  ;;  %v3447_v4 = vpack.c.bf16 %v409_v60, %v406_v59  ;;  %v395_v11 = vld [vmem:[#allocation5 + $0xd0] sm:$0xff] }
  0x43   :  { %2680 = vmatpush3.bf16.msra.mxu1 %v2677_v5  ;;  %v405_v5 = vld [vmem:[#allocation5 + $0x120] sm:$0xff]  ;;  %v408_v6 = vld [vmem:[#allocation5 + $0x138] sm:$0xff]  ;;  %v3450_v10 = vpack.c.bf16 %v392_v63, %v389_v62  ;;  %v398_v12 = vld [vmem:[#allocation5 + $0xe8] sm:$0xff] }
  0x44   :  { %2682 = vmatprep.subr.bf16.mxu1 %v2681_v14  ;;  %v412_v7 = vld [vmem:[#allocation5 + $0x158] sm:$0xff]  ;;  %v3455_v13 = vpack.c.bf16 %v408_v6, %v405_v5  ;;  %v411_v16 = vld [vmem:[#allocation5 + $0x150] sm:$0xff]  ;;  %v414_v19 = vld [vmem:[#allocation5 + $0x168] sm:$0xff]  ;;  %v3464_v20 = vpack.c.bf16 %v398_v12, %v395_v11 }
  0x45   :  { %2656 = vmatpush1.bf16.msra.mxu0 %v2655_v8  ;;  %v415_v8 = vld [vmem:[#allocation5 + $0x170] sm:$0xff]  ;;  %v401_v21 = vld [vmem:[#allocation5 + $0x100] sm:$0xff]  ;;  %v404_v22 = vld [vmem:[#allocation5 + $0x118] sm:$0xff] }
  0x46   :  { %2690 = vmatprep.subr.bf16.mxu0 %v3377_v9  ;;  %v3461_v15 = vpack.c.bf16 %v415_v8, %v412_v7  ;;  %v407_v27 = vld [vmem:[#allocation5 + $0x130] sm:$0xff]  ;;  %v410_v28 = vld [vmem:[#allocation5 + $0x148] sm:$0xff]  ;;  %v413_v30 = vld [vmem:[#allocation5 + $0x160] sm:$0xff] }
  0x47   :  { %2684 = vmatpush3.bf16.msra.mxu1 %v2681_v14  ;;  %v57_v14 = vld [vmem:[%s3892_s0 + $0x38] sm:$0xff]  ;;  %v3482_v29 = vpack.c.bf16 %v410_v28, %v407_v27  ;;  %v106_v38 = vld [vmem:[%s3894_s2] sm:$0x7] }
  0x48   :  { %188 = vmatmul.mubr.f32.vlgmr.msra.gmra.mrb[0].mxu0 %v3374_v36  ;;  %2686 = vmatprep.subr.bf16.mxu1 %v2685_v23  ;;  %v387_v36 = vld [vmem:[#allocation5 + $0x90] sm:$0xff]  ;;  %v416_v31 = vld [vmem:[#allocation5 + $0x178] sm:$0xff]  ;;  %v3554_v28 = vld [vmem:[%s3896_s4] ss:$0 sm:$0xff] }
  0x49   :  { %2692 = vmatpush1.bf16.msra.mxu0 %v3379_v17  ;;  %193 = vmatprep.mubr.f32.mxu0 %v3308_v0  ;;  %v3413_v45 = vpack.c.bf16 %v390_v37, %v387_v36  ;;  %v3490_v32 = vpack.c.bf16 %v416_v31, %v413_v30 }
  0x4a   :  { %2694 = vmatprep.subr.bf16.mxu0 %v3382_v18 }
  0x4b   :  { %2688 = vmatpush3.bf16.msra.mxu1 %v2685_v23  ;;  %v3471_v23 = vpack.c.bf16 %v414_v19, %v411_v16 }
  0x4c   :  { %194 = vmatmul.mubr.f32.gmra.mrb[2].mxu0 %v51_v24  ;;  %2721 = vmatprep.subr.bf16.mxu1 %v3309_v40 }
  0x4d   :  { %2696 = vmatpush1.bf16.msra.mxu0 %v3390_v25  ;;  %199 = vmatprep.mubr.f32.mxu0 %v3308_v0 }
  0x4e   :  { %2698 = vmatprep.subr.bf16.mxu0 %v3393_v26  ;;  %2334 = vmatmul.mubr.f32.vlgmr.msra.gmra.mrb[0].mxu1 %v51_v24  ;;  %v3475_v24 = vpack.c.bf16 %v404_v22, %v401_v21 }
  0x4f   :  { %2723 = vmatpush3.bf16.msra.mxu1 %v3406_v41  ;;  %2336 = vmatprep.mubr.f32.mxu1 %v52_v33 }
  0x50   :  { %200 = vmatmul.mubr.f32.gmra.mrb[4].mxu0 %v52_v33  ;;  %2724 = vmatprep.subr.bf16.mxu1 %v3309_v40  ;;  %v108_v33 = vlaneseq }
  0x51   :  { %2700 = vmatpush1.bf16.msra.mxu0 %v3400_v34  ;;  %205 = vmatprep.mubr.f32.mxu0 %v3308_v0 }
  0x52   :  { %2702 = vmatprep.subr.bf16.mxu0 %v3403_v35  ;;  %2337 = vmatmul.mubr.f32.gmra.mrb[2].mxu1 %v53_v44  ;;  %v109_v36 = vshrl.u32 %v108_v33, 7 }
  0x53   :  { %2726 = vmatpush3.bf16.msra.mxu1 %v3419_v51  ;;  %2339 = vmatprep.mubr.f32.mxu1 %v54_v54 }
  0x54   :  { %206 = vmatmul.mubr.f32.gmra.mrb[6].mxu0 %v53_v44  ;;  %2727 = vmatprep.subr.bf16.mxu1 %v3309_v40  ;;  %v118_v37 = vsub.s32 2, %v109_v36  ;;  %v110_v63 = vsub.s32 0, %v109_v36 }
  0x55   :  { %2704 = vmatpush1.bf16.msra.mxu0 %v3413_v45  ;;  %211 = vmatprep.mubr.f32.mxu0 %v3308_v0 }
  0x56   :  { %2706 = vmatprep.subr.bf16.mxu0 %v3416_v46  ;;  %2340 = vmatmul.mubr.f32.gmra.mrb[4].mxu1 %v55_v1  ;;  %v119_v39 = vrot.slane %v106_v38, %v118_v37 }
  0x57   :  { %2729 = vmatpush3.bf16.msra.mxu1 %v3433_v61  ;;  %2342 = vmatprep.mubr.f32.mxu1 %v56_v3 }
  0x58   :  { %212 = vmatmul.mubr.f32.gmra.mrb[8].mxu0 %v54_v54  ;;  %2730 = vmatprep.subr.bf16.mxu1 %v3309_v40 }
  0x59   :  { %2708 = vmatpush1.bf16.msra.mxu0 %v3427_v55  ;;  %217 = vmatprep.mubr.f32.mxu0 %v3308_v0 }
  0x5a   :  { %2710 = vmatprep.subr.bf16.mxu0 %v3430_v56  ;;  %2343 = vmatmul.mubr.f32.gmra.mrb[6].mxu1 %v57_v14 }
  0x5b   :  { %2732 = vmatpush3.bf16.msra.mxu1 %v3450_v10  ;;  %2377 = vmatprep.mubr.msk.f32.mxu1 %vm3310_vm0, %v3308_v0 }
  0x5c   :  { %218 = vmatmul.mubr.f32.gmra.mrb[10].mxu0 %v55_v1  ;;  %2733 = vmatprep.subr.bf16.mxu1 %v3309_v40  ;;  %v114_v1 = vsub.s32 1, %v109_v36 }
  0x5d   :  { %2712 = vmatpush1.bf16.msra.mxu0 %v3441_v2  ;;  %223 = vmatprep.mubr.f32.mxu0 %v3308_v0 }
  0x5e   :  { %2714 = vmatprep.subr.bf16.mxu0 %v3447_v4  ;;  %v3547_v6 = vrot.slane %v106_v38, %v114_v1 }
  0x5f   :  { %2735 = vmatpush3.bf16.msra.mxu1 %v3464_v20 }
  0x60   :  { %224 = vmatmul.mubr.f32.gmra.mrb[12].mxu0 %v56_v3  ;;  %2736 = vmatprep.subr.bf16.mxu1 %v3309_v40  ;;  %v3545_v3 = vrot.slane %v106_v38, %v110_v63 }
  0x61   :  { %2716 = vmatpush1.bf16.msra.mxu0 %v3455_v13  ;;  %229 = vmatprep.mubr.f32.mxu0 %v3308_v0 }
  0x62   :  { %2718 = vmatprep.subr.bf16.mxu0 %v3461_v15 }
  0x63   :  { %2738 = vmatpush3.bf16.msra.mxu1 %v3475_v24 }
  0x64   :  { %230 = vmatmul.mubr.f32.gmra.mrb[14].mxu0 %v57_v14  ;;  %2739 = vmatprep.subr.bf16.mxu1 %v3309_v40 }
  0x65   :  { %2720 = vmatpush1.bf16.msra.mxu0 %v3471_v23  ;;  %481 = vmatprep.mubr.f32.mxu0 %v3308_v0 }
  0x66   :  { %2746 = vmatprep.subr.bf16.mxu0 %v3377_v9 }
  0x67   :  { %2741 = vmatpush3.bf16.msra.mxu1 %v3482_v29 }
  0x68   :  { %482 = vmatmul.mubr.f32.vlgmr.msra.gmra.mrb[0].mxu0 %v3308_v0  ;;  %2742 = vmatprep.subr.bf16.mxu1 %v3309_v40 }
  0x69   :  { %2748 = vmatpush1.bf16.msra.mxu0 %v3379_v17  ;;  %703 = vmatprep.mubr.f32.mxu0 %v3308_v0 }
  0x6a   :  { %2750 = vmatprep.subr.bf16.mxu0 %v3382_v18 }
  0x6b   :  { %2744 = vmatpush3.bf16.msra.mxu1 %v3490_v32 }
  0x6c   :  { %2777 = vmatprep.subr.bf16.mxu1 %v3309_v40 }
  0x6d   :  { %2752 = vmatpush1.bf16.msra.mxu0 %v3390_v25 }
  0x6e   :  { %2754 = vmatprep.subr.bf16.mxu0 %v3393_v26  ;;  %2378 = vmatmul.mubr.f32.vlgmr.msra.gmra.mrb[8].mxu1 %v3308_v0 }
  0x6f   :  { %2779 = vmatpush3.bf16.msra.mxu1 %v3406_v41  ;;  %2412 = vmatprep.mubr.msk.f32.mxu1 %vm3310_vm0, %v3308_v0 }
  0x70   :  { %2780 = vmatprep.subr.bf16.mxu1 %v3309_v40 }
  0x71   :  { %2756 = vmatpush1.bf16.msra.mxu0 %v3400_v34 }
  0x72   :  { %2758 = vmatprep.subr.bf16.mxu0 %v3403_v35 }
  0x73   :  { %2782 = vmatpush3.bf16.msra.mxu1 %v3419_v51 }
  0x74   :  { %2783 = vmatprep.subr.bf16.mxu1 %v3309_v40 }
  0x75   :  { %2760 = vmatpush1.bf16.msra.mxu0 %v3413_v45 }
  0x76   :  { %2762 = vmatprep.subr.bf16.mxu0 %v3416_v46 }
  0x77   :  { %2785 = vmatpush3.bf16.msra.mxu1 %v3433_v61 }
  0x78   :  { %2786 = vmatprep.subr.bf16.mxu1 %v3309_v40 }
  0x79   :  { %2764 = vmatpush1.bf16.msra.mxu0 %v3427_v55 }
  0x7a   :  { %2766 = vmatprep.subr.bf16.mxu0 %v3430_v56 }
  0x7b   :  { %2788 = vmatpush3.bf16.msra.mxu1 %v3450_v10 }
  0x7c   :  { %2789 = vmatprep.subr.bf16.mxu1 %v3309_v40 }
  0x7d   :  { %2768 = vmatpush1.bf16.msra.mxu0 %v3441_v2 }
  0x7e   :  { %2770 = vmatprep.subr.bf16.mxu0 %v3447_v4 }
  0x7f   :  { %2791 = vmatpush3.bf16.msra.mxu1 %v3464_v20 }
  0x80   :  { %2792 = vmatprep.subr.bf16.mxu1 %v3309_v40 }
  0x81   :  { %2772 = vmatpush1.bf16.msra.mxu0 %v3455_v13 }
  0x82   :  { %2774 = vmatprep.subr.bf16.mxu0 %v3461_v15 }
  0x83   :  { %2794 = vmatpush3.bf16.msra.mxu1 %v3475_v24 }
  0x84   :  { %2795 = vmatprep.subr.bf16.mxu1 %v3309_v40 }
  0x85   :  { %2776 = vmatpush1.bf16.msra.mxu0 %v3471_v23 }
  0x86   :  { %2802 = vmatprep.subr.bf16.mxu0 %v3377_v9 }
  0x87   :  { %2797 = vmatpush3.bf16.msra.mxu1 %v3482_v29 }
  0x88   :  { %2798 = vmatprep.subr.bf16.mxu1 %v3309_v40 }
  0x8b   :  { %2800 = vmatpush3.bf16.msra.mxu1 %v3490_v32 }
  0x8c   :  { %2833 = vmatprep.subr.bf16.mxu1 %v3309_v40 }
 0x121   :  { %v2335_v42 = vpop.f32.mrb[0].mxu1 }
 0x122   :  { %v3531_v43 = vadd.f32 %v2335_v42, %v119_v39  ;;  %v302_v44 = vpop.f32.mrb[1].mxu1 }
 0x123   :  { %v303_v36 = vadd.f32 %v302_v44, %v119_v39 }
 0x125   :  { %v2338_v47 = vpop.f32.mrb[2].mxu1 }
 0x126   :  { %v3533_v48 = vadd.f32 %v2338_v47, %v119_v39  ;;  %v312_v49 = vpop.f32.mrb[3].mxu1 }
 0x127   :  { %v3535_v50 = vadd.f32 %v312_v49, %v119_v39 }
 0x129   :  { %v2341_v52 = vpop.f32.mrb[4].mxu1 }
 0x12a   :  { %v3537_v53 = vadd.f32 %v2341_v52, %v119_v39  ;;  %v322_v54 = vpop.f32.mrb[5].mxu1 }
 0x12b   :  { %v3539_v57 = vadd.f32 %v322_v54, %v119_v39 }
 0x12d   :  { %v2344_v58 = vpop.f32.mrb[6].mxu1 }
 0x12e   :  { %v3541_v59 = vadd.f32 %v2344_v58, %v119_v39  ;;  %v332_v60 = vpop.f32.mrb[7].mxu1 }
 0x12f   :  { %v3543_v62 = vadd.f32 %v332_v60, %v119_v39 }
 0x13b   :  { %v483_v5 = vpop.f32.mrb[0].mxu0 }
 0x13c   :  { %v3137_v7 = vadd.f32 %v483_v5, %v3545_v3  ;;  %v485_v8 = vpop.f32.mrb[1].mxu0 }
 0x13d   :  { %v3138_v12 = vadd.f32 %v485_v8, %v3547_v6 }
 0x13e   :  { %v2117_v11 = vmul.f32 -1.442695, %v3137_v7 }
 0x13f   :  { %v2118_v14 = vmul.f32 -1.442695, %v3138_v12 }
 0x140   :  { %3176 = vpow2.f32 %v2117_v11 }
 0x141   :  { %v554_v16 = vpop.f32.mrb[8].mxu1  ;;  %3178 = vpow2.f32 %v2118_v14 }
 0x142   :  { %v2379_v19 = vpop.f32.mrb[9].mxu1  ;;  %v578_v31 = vadd.f32 %v3554_v28, %v554_v16 }
 0x14a   :  { %v3177_v21 = vpop.eup %3176 }
 0x14b   :  { %v562_v22 = vadd.f32 1.0, %v3177_v21  ;;  %v3179_v27 = vpop.eup %3178 }
 0x14c   :  { %v569_v30 = vadd.f32 1.0, %v3179_v27 }
 0x14d   :  { %3180 = vrcp.f32 %v562_v22 }
 0x14e   :  { %3182 = vrcp.f32 %v569_v30 }
 0x157   :  { %v3181_v33 = vpop.eup %3180 }
 0x158   :  { %v579_v37 = vmul.f32 %v3181_v33, %v578_v31  ;;  %v3183_v42 = vpop.eup %3182 }
 0x159   :  { %v582_v47 = vsub.f32 1.0, %v3183_v42  ;;  %v584_v54 = vmul.f32 0.0, %v3183_v42  ;;  %v1246_v42 = vld [vmem:[#allocation5 + $0x20] sm:$0xff] }
 0x15a   :  { %v580_v38 = vadd.f32 %v579_v37, %v303_v36 }
 0x15c   :  { %3184 = vtanh.f32 %v580_v38 }
 0x166   :  { %v3185_v49 = vpop.eup %3184 }
 0x167   :  { %v583_v52 = vmul.f32 %v3185_v49, %v582_v47  ;;  %v1245_v49 = vld [vmem:[#allocation5 + $0x18] sm:$0xff] }
 0x169   :  { %v3557_v58 = vadd.f32 %v584_v54, %v583_v52  ;;  %v1249_v54 = vld [vmem:[#allocation5 + $0x38] sm:$0xff] }
 0x16b   :  { %586 = vst [vmem:[%s3897_s5] sm:$0xff] %v3557_v58  ;;  %704 = vmatmul.mubr.f32.vlgmr.msra.gmra.mrb[2].mxu0 %v3557_v58  ;;  %2413 = vmatmul.mubr.f32.vlgmr.msra.gmra.mrb[10].mxu1 %v3557_v58 }
 0x16c   :  { %2804 = vmatpush1.bf16.msra.mxu0 %v3379_v17  ;;  %2835 = vmatpush3.bf16.msra.mxu1 %v3406_v41 }
 0x16d   :  { %2806 = vmatprep.subr.bf16.mxu0 %v3382_v18  ;;  %2836 = vmatprep.subr.bf16.mxu1 %v3309_v40 }
 0x16e   :  { %920 = vmatprep.mubr.f32.mxu0 %v3308_v0  ;;  %2447 = vmatprep.mubr.msk.f32.mxu1 %vm3310_vm0, %v3308_v0 }
 0x170   :  { %2808 = vmatpush1.bf16.msra.mxu0 %v3390_v25  ;;  %2838 = vmatpush3.bf16.msra.mxu1 %v3419_v51 }
 0x171   :  { %2810 = vmatprep.subr.bf16.mxu0 %v3393_v26  ;;  %2839 = vmatprep.subr.bf16.mxu1 %v3309_v40 }
 0x174   :  { %2812 = vmatpush1.bf16.msra.mxu0 %v3400_v34  ;;  %2841 = vmatpush3.bf16.msra.mxu1 %v3433_v61 }
 0x175   :  { %2814 = vmatprep.subr.bf16.mxu0 %v3403_v35  ;;  %2842 = vmatprep.subr.bf16.mxu1 %v3309_v40 }
 0x178   :  { %2816 = vmatpush1.bf16.msra.mxu0 %v3413_v45  ;;  %2844 = vmatpush3.bf16.msra.mxu1 %v3450_v10 }
 0x179   :  { %2818 = vmatprep.subr.bf16.mxu0 %v3416_v46  ;;  %2845 = vmatprep.subr.bf16.mxu1 %v3309_v40 }
 0x17c   :  { %2820 = vmatpush1.bf16.msra.mxu0 %v3427_v55  ;;  %2847 = vmatpush3.bf16.msra.mxu1 %v3464_v20 }
 0x17d   :  { %2822 = vmatprep.subr.bf16.mxu0 %v3430_v56  ;;  %2848 = vmatprep.subr.bf16.mxu1 %v3309_v40 }
 0x180   :  { %2824 = vmatpush1.bf16.msra.mxu0 %v3441_v2  ;;  %2850 = vmatpush3.bf16.msra.mxu1 %v3475_v24 }
 0x181   :  { %2826 = vmatprep.subr.bf16.mxu0 %v3447_v4  ;;  %2851 = vmatprep.subr.bf16.mxu1 %v3309_v40 }
 0x184   :  { %2828 = vmatpush1.bf16.msra.mxu0 %v3455_v13  ;;  %2853 = vmatpush3.bf16.msra.mxu1 %v3482_v29 }
 0x185   :  { %2830 = vmatprep.subr.bf16.mxu0 %v3461_v15  ;;  %2854 = vmatprep.subr.bf16.mxu1 %v3309_v40 }
 0x188   :  { %2832 = vmatpush1.bf16.msra.mxu0 %v3471_v23  ;;  %2856 = vmatpush3.bf16.msra.mxu1 %v3490_v32 }
 0x189   :  { %2858 = vmatprep.subr.bf16.mxu0 %v3377_v9  ;;  %2889 = vmatprep.subr.bf16.mxu1 %v3309_v40 }
 0x23e   :  { %v705_v39 = vpop.f32.mrb[2].mxu0  ;;  %v776_v44 = vpop.f32.mrb[10].mxu1 }
 0x23f   :  { %v3139_v60 = vadd.f32 %v705_v39, %v3545_v3  ;;  %v707_v63 = vpop.f32.mrb[3].mxu0  ;;  %v2414_v1 = vpop.f32.mrb[11].mxu1  ;;  %v794_v9 = vadd.f32 %v3554_v28, %v776_v44  ;;  %v1248_v39 = vld [vmem:[#allocation5 + $0x30] sm:$0xff] }
 0x240   :  { %v3140_v7 = vadd.f32 %v707_v63, %v3547_v6  ;;  %v1258_v63 = vld [vmem:[#allocation5 + $0x80] sm:$0xff] }
 0x241   :  { %v2120_v5 = vmul.f32 -1.442695, %v3139_v60  ;;  %v1255_v60 = vld [vmem:[#allocation5 + $0x68] sm:$0xff] }
 0x242   :  { %v2121_v8 = vmul.f32 -1.442695, %v3140_v7  ;;  %v3675_v1 = vpack.c.bf16 %v1258_v63, %v1255_v60  ;;  %v1257_v7 = vld [vmem:[#allocation5 + $0x78] sm:$0xff] }
 0x243   :  { %3186 = vpow2.f32 %v2120_v5  ;;  %v1254_v5 = vld [vmem:[#allocation5 + $0x60] sm:$0xff] }
 0x244   :  { %3188 = vpow2.f32 %v2121_v8  ;;  %v3677_v8 = vpack.c.bf16 %v1257_v7, %v1254_v5 }
 0x24d   :  { %v3187_v11 = vpop.eup %3186 }
 0x24e   :  { %v784_v12 = vadd.f32 1.0, %v3187_v11  ;;  %v3189_v14 = vpop.eup %3188  ;;  %v1261_v11 = vld [vmem:[#allocation5 + $0x98] sm:$0xff] }
 0x24f   :  { %v791_v16 = vadd.f32 1.0, %v3189_v14 }
 0x250   :  { %3190 = vrcp.f32 %v784_v12  ;;  %v1264_v12 = vld [vmem:[#allocation5 + $0xb0] sm:$0xff] }
 0x251   :  { %3192 = vrcp.f32 %v791_v16  ;;  %v3681_v14 = vpack.c.bf16 %v1264_v12, %v1261_v11  ;;  %v1260_v16 = vld [vmem:[#allocation5 + $0x90] sm:$0xff] }
 0x25a   :  { %v3191_v19 = vpop.eup %3190 }
 0x25b   :  { %v795_v21 = vmul.f32 %v3191_v19, %v794_v9  ;;  %v3193_v27 = vpop.eup %3192  ;;  %v1263_v9 = vld [vmem:[#allocation5 + $0xa8] sm:$0xff]  ;;  %v1262_v19 = vld [vmem:[#allocation5 + $0xa0] sm:$0xff] }
 0x25c   :  { %v798_v30 = vsub.f32 1.0, %v3193_v27  ;;  %v800_v36 = vmul.f32 %v3193_v27, %v3557_v58 }
 0x25d   :  { %v796_v22 = vadd.f32 %v795_v21, %v3531_v43  ;;  %v3683_v21 = vpack.c.bf16 %v1263_v9, %v1260_v16 }
 0x25f   :  { %3194 = vtanh.f32 %v796_v22  ;;  %v1265_v22 = vld [vmem:[#allocation5 + $0xb8] sm:$0xff] }
 0x260   :  { %v3686_v27 = vpack.c.bf16 %v1265_v22, %v1262_v19 }
 0x269   :  { %v3195_v31 = vpop.eup %3194 }
 0x26a   :  { %v799_v33 = vmul.f32 %v3195_v31, %v798_v30  ;;  %v1267_v30 = vld [vmem:[#allocation5 + $0xc8] sm:$0xff]  ;;  %v1270_v31 = vld [vmem:[#allocation5 + $0xe0] sm:$0xff] }
 0x26c   :  { %v801_v37 = vadd.f32 %v800_v36, %v799_v33  ;;  %v3690_v33 = vpack.c.bf16 %v1270_v31, %v1267_v30  ;;  %v1266_v36 = vld [vmem:[#allocation5 + $0xc0] sm:$0xff] }
 0x26e   :  { %2122 = vst [vmem:[%s3897_s5 + $0x8] sm:$0xff] %v801_v37  ;;  %921 = vmatmul.mubr.f32.vlgmr.msra.gmra.mrb[4].mxu0 %v801_v37  ;;  %2448 = vmatmul.mubr.f32.vlgmr.msra.gmra.mrb[12].mxu1 %v801_v37 }
 0x26f   :  { %2860 = vmatpush1.bf16.msra.mxu0 %v3379_v17  ;;  %2891 = vmatpush3.bf16.msra.mxu1 %v3406_v41 }
 0x270   :  { %2862 = vmatprep.subr.bf16.mxu0 %v3382_v18  ;;  %2892 = vmatprep.subr.bf16.mxu1 %v3309_v40 }
 0x271   :  { %1137 = vmatprep.mubr.f32.mxu0 %v3308_v0  ;;  %2482 = vmatprep.mubr.msk.f32.mxu1 %vm3310_vm0, %v3308_v0 }
 0x273   :  { %2864 = vmatpush1.bf16.msra.mxu0 %v3390_v25  ;;  %2894 = vmatpush3.bf16.msra.mxu1 %v3419_v51 }
 0x274   :  { %2866 = vmatprep.subr.bf16.mxu0 %v3393_v26  ;;  %2895 = vmatprep.subr.bf16.mxu1 %v3309_v40 }
 0x277   :  { %2868 = vmatpush1.bf16.msra.mxu0 %v3400_v34  ;;  %2897 = vmatpush3.bf16.msra.mxu1 %v3433_v61 }
 0x278   :  { %2870 = vmatprep.subr.bf16.mxu0 %v3403_v35  ;;  %2898 = vmatprep.subr.bf16.mxu1 %v3309_v40 }
 0x27b   :  { %2872 = vmatpush1.bf16.msra.mxu0 %v3413_v45  ;;  %2900 = vmatpush3.bf16.msra.mxu1 %v3450_v10 }
 0x27c   :  { %2874 = vmatprep.subr.bf16.mxu0 %v3416_v46  ;;  %2901 = vmatprep.subr.bf16.mxu1 %v3309_v40 }
 0x27f   :  { %2876 = vmatpush1.bf16.msra.mxu0 %v3427_v55  ;;  %2903 = vmatpush3.bf16.msra.mxu1 %v3464_v20 }
 0x280   :  { %2878 = vmatprep.subr.bf16.mxu0 %v3430_v56  ;;  %2904 = vmatprep.subr.bf16.mxu1 %v3309_v40 }
 0x283   :  { %2880 = vmatpush1.bf16.msra.mxu0 %v3441_v2  ;;  %2906 = vmatpush3.bf16.msra.mxu1 %v3475_v24 }
 0x284   :  { %2882 = vmatprep.subr.bf16.mxu0 %v3447_v4  ;;  %2907 = vmatprep.subr.bf16.mxu1 %v3309_v40 }
 0x287   :  { %2884 = vmatpush1.bf16.msra.mxu0 %v3455_v13  ;;  %2909 = vmatpush3.bf16.msra.mxu1 %v3482_v29 }
 0x288   :  { %2886 = vmatprep.subr.bf16.mxu0 %v3461_v15  ;;  %2910 = vmatprep.subr.bf16.mxu1 %v3309_v40 }
 0x28b   :  { %2888 = vmatpush1.bf16.msra.mxu0 %v3471_v23  ;;  %2912 = vmatpush3.bf16.msra.mxu1 %v3490_v32 }
 0x28c   :  { %2945 = vmatprep.subr.bf16.mxu1 %v3309_v40 }
 0x341   :  { %v922_v17 = vpop.f32.mrb[4].mxu0  ;;  %v993_v18 = vpop.f32.mrb[12].mxu1 }
 0x342   :  { %v3141_v25 = vadd.f32 %v922_v17, %v3545_v3  ;;  %v924_v26 = vpop.f32.mrb[5].mxu0  ;;  %v2449_v34 = vpop.f32.mrb[13].mxu1  ;;  %v1011_v10 = vadd.f32 %v3554_v28, %v993_v18  ;;  %v1268_v17 = vld [vmem:[#allocation5 + $0xd0] sm:$0xff] }
 0x343   :  { %v3142_v45 = vadd.f32 %v924_v26, %v3547_v6  ;;  %v1273_v34 = vld [vmem:[#allocation5 + $0xf8] sm:$0xff] }
 0x344   :  { %v2123_v35 = vmul.f32 -1.442695, %v3141_v25  ;;  %v1271_v25 = vld [vmem:[#allocation5 + $0xe8] sm:$0xff] }
 0x345   :  { %v2124_v46 = vmul.f32 -1.442695, %v3142_v45  ;;  %v3696_v26 = vpack.c.bf16 %v1271_v25, %v1268_v17  ;;  %v1272_v45 = vld [vmem:[#allocation5 + $0xf0] sm:$0xff] }
 0x346   :  { %3196 = vpow2.f32 %v2123_v35  ;;  %v1276_v35 = vld [vmem:[#allocation5 + $0x110] sm:$0xff] }
 0x347   :  { %3198 = vpow2.f32 %v2124_v46  ;;  %v3700_v46 = vpack.c.bf16 %v1276_v35, %v1273_v34 }
 0x350   :  { %v3197_v55 = vpop.eup %3196 }
 0x351   :  { %v1001_v56 = vadd.f32 1.0, %v3197_v55  ;;  %v3199_v2 = vpop.eup %3198  ;;  %v1275_v55 = vld [vmem:[#allocation5 + $0x108] sm:$0xff] }
 0x352   :  { %v1008_v4 = vadd.f32 1.0, %v3199_v2  ;;  %v1277_v2 = vld [vmem:[#allocation5 + $0x118] sm:$0xff] }
 0x353   :  { %3200 = vrcp.f32 %v1001_v56  ;;  %v1274_v56 = vld [vmem:[#allocation5 + $0x100] sm:$0xff] }
 0x354   :  { %3202 = vrcp.f32 %v1008_v4  ;;  %v3703_v4 = vpack.c.bf16 %v1275_v55, %v1272_v45 }
 0x35d   :  { %v3201_v13 = vpop.eup %3200 }
 0x35e   :  { %v1012_v15 = vmul.f32 %v3201_v13, %v1011_v10  ;;  %v3203_v23 = vpop.eup %3202  ;;  %v3705_v10 = vpack.c.bf16 %v1277_v2, %v1274_v56  ;;  %v1279_v13 = vld [vmem:[#allocation5 + $0x128] sm:$0xff] }
 0x35f   :  { %v1015_v24 = vsub.f32 1.0, %v3203_v23  ;;  %v1017_v43 = vmul.f32 %v3203_v23, %v801_v37  ;;  %v1269_v37 = vld [vmem:[#allocation5 + $0xd8] sm:$0xff] }
 0x360   :  { %v1013_v20 = vadd.f32 %v1012_v15, %v3535_v50  ;;  %v1243_v50 = vld [vmem:[#allocation5 + $0x8] sm:$0xff]  ;;  %v3693_v18 = vpack.c.bf16 %v1269_v37, %v1266_v36  ;;  %v1282_v15 = vld [vmem:[#allocation5 + $0x140] sm:$0xff] }
 0x361   :  { %v3663_v47 = vpack.c.bf16 %v1246_v42, %v1243_v50  ;;  %v3708_v23 = vpack.c.bf16 %v1282_v15, %v1279_v13  ;;  %v1285_v50 = vld [vmem:[#allocation5 + $0x158] sm:$0xff]  ;;  %v1288_v42 = vld [vmem:[#allocation5 + $0x170] sm:$0xff] }
 0x362   :  { %3204 = vtanh.f32 %v1013_v20  ;;  %v1278_v20 = vld [vmem:[#allocation5 + $0x120] sm:$0xff] }
 0x363   :  { %2914 = vmatprep.subr.bf16.mxu0 %v3663_v47 }
 0x36c   :  { %v3205_v29 = vpop.eup %3204 }
 0x36d   :  { %v1016_v32 = vmul.f32 %v3205_v29, %v1015_v24  ;;  %v1281_v24 = vld [vmem:[#allocation5 + $0x138] sm:$0xff]  ;;  %v1280_v29 = vld [vmem:[#allocation5 + $0x130] sm:$0xff] }
 0x36f   :  { %v3646_v38 = vadd.f32 %v1017_v43, %v1016_v32  ;;  %v1283_v32 = vld [vmem:[#allocation5 + $0x148] sm:$0xff]  ;;  %v3711_v43 = vpack.c.bf16 %v1281_v24, %v1278_v20  ;;  %v1467_v24 = vld [vmem:[#allocation5 + $0x40] sm:$0xff] }
 0x371   :  { %2125 = vst [vmem:[%s3897_s5 + $0x10] sm:$0xff] %v3646_v38  ;;  %1138 = vmatmul.mubr.f32.vlgmr.msra.gmra.mrb[6].mxu0 %v3646_v38  ;;  %2483 = vmatmul.mubr.f32.vlgmr.msra.gmra.mrb[14].mxu1 %v3646_v38 }
 0x372   :  { %2947 = vmatpush3.bf16.msra.mxu1 %v3406_v41  ;;  %1354 = vmatprep.mubr.f32.mxu0 %v3308_v0  ;;  %v1242_v41 = vld [vmem:[#allocation5] sm:$0xff] }
 0x373   :  { %2948 = vmatprep.subr.bf16.mxu1 %v3309_v40  ;;  %2517 = vmatprep.mubr.msk.f32.mxu1 %vm3310_vm0, %v3308_v0  ;;  %v3665_v52 = vpack.c.bf16 %v1245_v49, %v1242_v41  ;;  %v3715_v41 = vpack.c.bf16 %v1283_v32, %v1280_v29  ;;  %v3717_v49 = vpack.c.bf16 %v1288_v42, %v1285_v50  ;;  %v1470_v29 = vld [vmem:[#allocation5 + $0x58] sm:$0xff]  ;;  %v1473_v50 = vld [vmem:[#allocation5 + $0x70] sm:$0xff]  ;;  %v1476_v42 = vld [vmem:[#allocation5 + $0x88] sm:$0xff] }
 0x374   :  { %v3768_v32 = vpack.c.bf16 %v1470_v29, %v1467_v24 }
 0x375   :  { %2916 = vmatpush1.bf16.msra.mxu0 %v3665_v52 }
 0x376   :  { %2950 = vmatpush3.bf16.msra.mxu1 %v3419_v51  ;;  %v1252_v51 = vld [vmem:[#allocation5 + $0x50] sm:$0xff] }
 0x377   :  { %2951 = vmatprep.subr.bf16.mxu1 %v3309_v40  ;;  %v3669_v58 = vpack.c.bf16 %v1252_v51, %v1249_v54  ;;  %v1284_v54 = vld [vmem:[#allocation5 + $0x150] sm:$0xff]  ;;  %v1287_v51 = vld [vmem:[#allocation5 + $0x168] sm:$0xff] }
 0x378   :  { %v3721_v60 = vpack.c.bf16 %v1287_v51, %v1284_v54  ;;  %v3772_v54 = vpack.c.bf16 %v1476_v42, %v1473_v50 }
 0x379   :  { %2918 = vmatprep.subr.bf16.mxu0 %v3669_v58 }
 0x37a   :  { %2953 = vmatpush3.bf16.msra.mxu1 %v3433_v61  ;;  %v1251_v61 = vld [vmem:[#allocation5 + $0x48] sm:$0xff] }
 0x37b   :  { %2954 = vmatprep.subr.bf16.mxu1 %v3309_v40  ;;  %v3671_v44 = vpack.c.bf16 %v1251_v61, %v1248_v39  ;;  %v1286_v39 = vld [vmem:[#allocation5 + $0x160] sm:$0xff]  ;;  %v1289_v61 = vld [vmem:[#allocation5 + $0x178] sm:$0xff] }
 0x37c   :  { %v3725_v63 = vpack.c.bf16 %v1289_v61, %v1286_v39 }
 0x37d   :  { %2920 = vmatpush1.bf16.msra.mxu0 %v3671_v44 }
 0x37e   :  { %2922 = vmatprep.subr.bf16.mxu0 %v3675_v1  ;;  %2956 = vmatpush3.bf16.msra.mxu1 %v3686_v27 }
 0x37f   :  { %2957 = vmatprep.subr.bf16.mxu1 %v3309_v40 }
 0x381   :  { %2924 = vmatpush1.bf16.msra.mxu0 %v3677_v8 }
 0x382   :  { %2926 = vmatprep.subr.bf16.mxu0 %v3681_v14  ;;  %2959 = vmatpush3.bf16.msra.mxu1 %v3696_v26 }
 0x383   :  { %2960 = vmatprep.subr.bf16.mxu1 %v3309_v40 }
 0x385   :  { %2928 = vmatpush1.bf16.msra.mxu0 %v3683_v21 }
 0x386   :  { %2930 = vmatprep.subr.bf16.mxu0 %v3690_v33  ;;  %2962 = vmatpush3.bf16.msra.mxu1 %v3705_v10 }
 0x387   :  { %2963 = vmatprep.subr.bf16.mxu1 %v3309_v40 }
 0x389   :  { %2932 = vmatpush1.bf16.msra.mxu0 %v3693_v18 }
 0x38a   :  { %2934 = vmatprep.subr.bf16.mxu0 %v3700_v46  ;;  %2965 = vmatpush3.bf16.msra.mxu1 %v3715_v41 }
 0x38b   :  { %2966 = vmatprep.subr.bf16.mxu1 %v3309_v40 }
 0x38d   :  { %2936 = vmatpush1.bf16.msra.mxu0 %v3703_v4 }
 0x38e   :  { %2938 = vmatprep.subr.bf16.mxu0 %v3708_v23  ;;  %2968 = vmatpush3.bf16.msra.mxu1 %v3725_v63 }
 0x38f   :  { %3001 = vmatprep.subr.bf16.mxu1 %v3309_v40 }
 0x391   :  { %2940 = vmatpush1.bf16.msra.mxu0 %v3711_v43 }
 0x392   :  { %2942 = vmatprep.subr.bf16.mxu0 %v3717_v49 }
 0x395   :  { %2944 = vmatpush1.bf16.msra.mxu0 %v3721_v60 }
 0x396   :  { %2970 = vmatprep.subr.bf16.mxu0 %v3663_v47 }
 0x444   :  { %v1139_v5 = vpop.f32.mrb[6].mxu0  ;;  %v1210_v7 = vpop.f32.mrb[14].mxu1 }
 0x445   :  { %v3143_v11 = vadd.f32 %v1139_v5, %v3545_v3  ;;  %v1141_v12 = vpop.f32.mrb[7].mxu0  ;;  %v2484_v16 = vpop.f32.mrb[15].mxu1  ;;  %v1228_v17 = vadd.f32 %v3554_v28, %v1210_v7 }
 0x446   :  { %v3144_v19 = vadd.f32 %v1141_v12, %v3547_v6 }
 0x447   :  { %v2126_v9 = vmul.f32 -1.442695, %v3143_v11 }
 0x448   :  { %v2127_v22 = vmul.f32 -1.442695, %v3144_v19 }
 0x449   :  { %3206 = vpow2.f32 %v2126_v9 }
 0x44a   :  { %3208 = vpow2.f32 %v2127_v22 }
 0x453   :  { %v3207_v30 = vpop.eup %3206 }
 0x454   :  { %v1218_v31 = vadd.f32 1.0, %v3207_v30  ;;  %v3209_v36 = vpop.eup %3208 }
 0x455   :  { %v1225_v37 = vadd.f32 1.0, %v3209_v36 }
 0x456   :  { %3210 = vrcp.f32 %v1218_v31 }
 0x457   :  { %3212 = vrcp.f32 %v1225_v37 }
 0x460   :  { %v3211_v25 = vpop.eup %3210 }
 0x461   :  { %v1229_v34 = vmul.f32 %v3211_v25, %v1228_v17  ;;  %v3213_v45 = vpop.eup %3212 }
 0x462   :  { %v1232_v55 = vsub.f32 1.0, %v3213_v45  ;;  %v1234_v13 = vmul.f32 %v3213_v45, %v3646_v38  ;;  %v1464_v38 = vld [vmem:[#allocation5 + $0x28] sm:$0xff] }
 0x463   :  { %v1230_v35 = vadd.f32 %v1229_v34, %v3533_v48  ;;  %v1461_v48 = vld [vmem:[#allocation5 + $0x10] sm:$0xff] }
 0x464   :  { %v3764_v20 = vpack.c.bf16 %v1464_v38, %v1461_v48 }
 0x465   :  { %3214 = vtanh.f32 %v1230_v35 }
 0x46f   :  { %v3215_v56 = vpop.eup %3214 }
 0x470   :  { %v1233_v2 = vmul.f32 %v3215_v56, %v1232_v55 }
 0x472   :  { %v3737_v15 = vadd.f32 %v1234_v13, %v1233_v2 }
 0x474   :  { %2128 = vst [vmem:[%s3897_s5 + $0x18] sm:$0xff] %v3737_v15  ;;  %1355 = vmatmul.mubr.f32.vlgmr.msra.gmra.mrb[8].mxu0 %v3737_v15  ;;  %2518 = vmatmul.mubr.f32.vlgmr.msra.gmra.mrb[16].mxu1 %v3737_v15 }
 0x475   :  { %2972 = vmatpush1.bf16.msra.mxu0 %v3665_v52  ;;  %1571 = vmatprep.mubr.f32.mxu0 %v3308_v0 }
 0x476   :  { %2974 = vmatprep.subr.bf16.mxu0 %v3669_v58  ;;  %2552 = vmatprep.mubr.msk.f32.mxu1 %vm3310_vm0, %v3308_v0 }
 0x477   :  { %3003 = vmatpush3.bf16.msra.mxu1 %v3764_v20 }
 0x478   :  { %3004 = vmatprep.subr.bf16.mxu1 %v3309_v40 }
 0x479   :  { %2976 = vmatpush1.bf16.msra.mxu0 %v3671_v44 }
 0x47a   :  { %2978 = vmatprep.subr.bf16.mxu0 %v3675_v1 }
 0x47b   :  { %3006 = vmatpush3.bf16.msra.mxu1 %v3768_v32 }
 0x47c   :  { %3007 = vmatprep.subr.bf16.mxu1 %v3309_v40 }
 0x47d   :  { %2980 = vmatpush1.bf16.msra.mxu0 %v3677_v8 }
 0x47e   :  { %2982 = vmatprep.subr.bf16.mxu0 %v3681_v14 }
 0x47f   :  { %3009 = vmatpush3.bf16.msra.mxu1 %v3772_v54 }
 0x480   :  { %3010 = vmatprep.subr.bf16.mxu1 %v3309_v40 }
 0x481   :  { %2984 = vmatpush1.bf16.msra.mxu0 %v3683_v21 }
 0x482   :  { %2986 = vmatprep.subr.bf16.mxu0 %v3690_v33 }
 0x483   :  { %3012 = vmatpush3.bf16.msra.mxu1 %v3686_v27 }
 0x484   :  { %3013 = vmatprep.subr.bf16.mxu1 %v3309_v40 }
 0x485   :  { %2988 = vmatpush1.bf16.msra.mxu0 %v3693_v18 }
 0x486   :  { %2990 = vmatprep.subr.bf16.mxu0 %v3700_v46 }
 0x487   :  { %3015 = vmatpush3.bf16.msra.mxu1 %v3696_v26 }
 0x488   :  { %3016 = vmatprep.subr.bf16.mxu1 %v3309_v40 }
 0x489   :  { %2992 = vmatpush1.bf16.msra.mxu0 %v3703_v4 }
 0x48a   :  { %2994 = vmatprep.subr.bf16.mxu0 %v3708_v23 }
 0x48b   :  { %3018 = vmatpush3.bf16.msra.mxu1 %v3705_v10 }
 0x48c   :  { %3019 = vmatprep.subr.bf16.mxu1 %v3309_v40 }
 0x48d   :  { %2996 = vmatpush1.bf16.msra.mxu0 %v3711_v43 }
 0x48e   :  { %2998 = vmatprep.subr.bf16.mxu0 %v3717_v49 }
 0x48f   :  { %3021 = vmatpush3.bf16.msra.mxu1 %v3715_v41 }
 0x490   :  { %3022 = vmatprep.subr.bf16.mxu1 %v3309_v40 }
 0x491   :  { %3000 = vmatpush1.bf16.msra.mxu0 %v3721_v60 }
 0x492   :  { %3026 = vmatprep.subr.bf16.mxu0 %v3663_v47 }
 0x493   :  { %3024 = vmatpush3.bf16.msra.mxu1 %v3725_v63 }
 0x494   :  { %3057 = vmatprep.subr.bf16.mxu1 %v3309_v40 }
 0x547   :  { %v1356_v51 = vpop.f32.mrb[8].mxu0  ;;  %v1427_v39 = vpop.f32.mrb[16].mxu1 }
 0x548   :  { %v3145_v61 = vadd.f32 %v1356_v51, %v3545_v3  ;;  %v1358_v5 = vpop.f32.mrb[9].mxu0  ;;  %v2519_v7 = vpop.f32.mrb[17].mxu1  ;;  %v1445_v31 = vadd.f32 %v3554_v28, %v1427_v39 }
 0x549   :  { %v3146_v12 = vadd.f32 %v1358_v5, %v3547_v6 }
 0x54a   :  { %v2129_v11 = vmul.f32 -1.442695, %v3145_v61 }
 0x54b   :  { %v2130_v16 = vmul.f32 -1.442695, %v3146_v12 }
 0x54c   :  { %3216 = vpow2.f32 %v2129_v11 }
 0x54d   :  { %3218 = vpow2.f32 %v2130_v16 }
 0x556   :  { %v3217_v9 = vpop.eup %3216 }
 0x557   :  { %v1435_v19 = vadd.f32 1.0, %v3217_v9  ;;  %v3219_v22 = vpop.eup %3218 }
 0x558   :  { %v1442_v30 = vadd.f32 1.0, %v3219_v22 }
 0x559   :  { %3220 = vrcp.f32 %v1435_v19 }
 0x55a   :  { %3222 = vrcp.f32 %v1442_v30 }
 0x563   :  { %v3221_v36 = vpop.eup %3220 }
 0x564   :  { %v1446_v37 = vmul.f32 %v3221_v36, %v1445_v31  ;;  %v3223_v25 = vpop.eup %3222 }
 0x565   :  { %v1449_v34 = vsub.f32 1.0, %v3223_v25  ;;  %v1451_v55 = vmul.f32 %v3223_v25, %v3737_v15 }
 0x566   :  { %v1447_v17 = vadd.f32 %v1446_v37, %v3539_v57 }
 0x568   :  { %3224 = vtanh.f32 %v1447_v17 }
 0x572   :  { %v3225_v35 = vpop.eup %3224 }
 0x573   :  { %v1450_v45 = vmul.f32 %v3225_v35, %v1449_v34 }
 0x575   :  { %v3791_v56 = vadd.f32 %v1451_v55, %v1450_v45 }
 0x577   :  { %2131 = vst [vmem:[%s3897_s5 + $0x20] sm:$0xff] %v3791_v56  ;;  %1572 = vmatmul.mubr.f32.vlgmr.msra.gmra.mrb[10].mxu0 %v3791_v56  ;;  %2553 = vmatmul.mubr.f32.vlgmr.msra.gmra.mrb[18].mxu1 %v3791_v56 }
 0x578   :  { %3028 = vmatpush1.bf16.msra.mxu0 %v3665_v52  ;;  %3059 = vmatpush3.bf16.msra.mxu1 %v3764_v20 }
 0x579   :  { %3030 = vmatprep.subr.bf16.mxu0 %v3669_v58  ;;  %3060 = vmatprep.subr.bf16.mxu1 %v3309_v40 }
 0x57a   :  { %1788 = vmatprep.mubr.f32.mxu0 %v3308_v0  ;;  %2587 = vmatprep.mubr.msk.f32.mxu1 %vm3310_vm0, %v3308_v0 }
 0x57c   :  { %3032 = vmatpush1.bf16.msra.mxu0 %v3671_v44  ;;  %3062 = vmatpush3.bf16.msra.mxu1 %v3768_v32 }
 0x57d   :  { %3034 = vmatprep.subr.bf16.mxu0 %v3675_v1  ;;  %3063 = vmatprep.subr.bf16.mxu1 %v3309_v40 }
 0x580   :  { %3036 = vmatpush1.bf16.msra.mxu0 %v3677_v8  ;;  %3065 = vmatpush3.bf16.msra.mxu1 %v3772_v54 }
 0x581   :  { %3038 = vmatprep.subr.bf16.mxu0 %v3681_v14  ;;  %3066 = vmatprep.subr.bf16.mxu1 %v3309_v40 }
 0x584   :  { %3040 = vmatpush1.bf16.msra.mxu0 %v3683_v21  ;;  %3068 = vmatpush3.bf16.msra.mxu1 %v3686_v27 }
 0x585   :  { %3042 = vmatprep.subr.bf16.mxu0 %v3690_v33  ;;  %3069 = vmatprep.subr.bf16.mxu1 %v3309_v40 }
 0x588   :  { %3044 = vmatpush1.bf16.msra.mxu0 %v3693_v18  ;;  %3071 = vmatpush3.bf16.msra.mxu1 %v3696_v26 }
 0x589   :  { %3046 = vmatprep.subr.bf16.mxu0 %v3700_v46  ;;  %3072 = vmatprep.subr.bf16.mxu1 %v3309_v40 }
 0x58c   :  { %3048 = vmatpush1.bf16.msra.mxu0 %v3703_v4  ;;  %3074 = vmatpush3.bf16.msra.mxu1 %v3705_v10 }
 0x58d   :  { %3050 = vmatprep.subr.bf16.mxu0 %v3708_v23  ;;  %3075 = vmatprep.subr.bf16.mxu1 %v3309_v40 }
 0x590   :  { %3052 = vmatpush1.bf16.msra.mxu0 %v3711_v43  ;;  %3077 = vmatpush3.bf16.msra.mxu1 %v3715_v41 }
 0x591   :  { %3054 = vmatprep.subr.bf16.mxu0 %v3717_v49  ;;  %3078 = vmatprep.subr.bf16.mxu1 %v3309_v40 }
 0x594   :  { %3056 = vmatpush1.bf16.msra.mxu0 %v3721_v60  ;;  %3080 = vmatpush3.bf16.msra.mxu1 %v3725_v63 }
 0x595   :  { %3082 = vmatprep.subr.bf16.mxu0 %v3663_v47  ;;  %3113 = vmatprep.subr.bf16.mxu1 %v3309_v40 }
 0x64a   :  { %v1573_v57 = vpop.f32.mrb[10].mxu0  ;;  %v1644_v2 = vpop.f32.mrb[18].mxu1 }
 0x64b   :  { %v3147_v13 = vadd.f32 %v1573_v57, %v3545_v3  ;;  %v1575_v15 = vpop.f32.mrb[11].mxu0  ;;  %v2554_v48 = vpop.f32.mrb[19].mxu1  ;;  %v1662_v47 = vadd.f32 %v3554_v28, %v1644_v2 }
 0x64c   :  { %v3148_v24 = vadd.f32 %v1575_v15, %v3547_v6 }
 0x64d   :  { %v2132_v38 = vmul.f32 -1.442695, %v3147_v13 }
 0x64e   :  { %v2133_v29 = vmul.f32 -1.442695, %v3148_v24 }
 0x64f   :  { %3226 = vpow2.f32 %v2132_v38 }
 0x650   :  { %3228 = vpow2.f32 %v2133_v29 }
 0x659   :  { %v3227_v50 = vpop.eup %3226 }
 0x65a   :  { %v1652_v42 = vadd.f32 1.0, %v3227_v50  ;;  %v3229_v51 = vpop.eup %3228 }
 0x65b   :  { %v1659_v39 = vadd.f32 1.0, %v3229_v51 }
 0x65c   :  { %3230 = vrcp.f32 %v1652_v42 }
 0x65d   :  { %3232 = vrcp.f32 %v1659_v39 }
 0x666   :  { %v3231_v61 = vpop.eup %3230 }
 0x667   :  { %v1663_v5 = vmul.f32 %v3231_v61, %v1662_v47  ;;  %v3233_v11 = vpop.eup %3232 }
 0x668   :  { %v1666_v12 = vsub.f32 1.0, %v3233_v11  ;;  %v1668_v19 = vmul.f32 %v3233_v11, %v3791_v56 }
 0x669   :  { %v1664_v7 = vadd.f32 %v1663_v5, %v3537_v53 }
 0x66b   :  { %3234 = vtanh.f32 %v1664_v7 }
 0x675   :  { %v3235_v16 = vpop.eup %3234 }
 0x676   :  { %v1667_v9 = vmul.f32 %v3235_v16, %v1666_v12 }
 0x678   :  { %v1669_v22 = vadd.f32 %v1668_v19, %v1667_v9 }
 0x67a   :  { %2134 = vst [vmem:[%s3897_s5 + $0x28] sm:$0xff] %v1669_v22  ;;  %1789 = vmatmul.mubr.f32.vlgmr.msra.gmra.mrb[12].mxu0 %v1669_v22  ;;  %2588 = vmatmul.mubr.f32.vlgmr.msra.gmra.mrb[20].mxu1 %v1669_v22 }
 0x67b   :  { %3084 = vmatpush1.bf16.msra.mxu0 %v3665_v52  ;;  %3115 = vmatpush3.bf16.msra.mxu1 %v3764_v20 }
 0x67c   :  { %3086 = vmatprep.subr.bf16.mxu0 %v3669_v58  ;;  %3116 = vmatprep.subr.bf16.mxu1 %v3309_v40 }
 0x67d   :  { %2005 = vmatprep.mubr.f32.mxu0 %v3308_v0  ;;  %2622 = vmatprep.mubr.msk.f32.mxu1 %vm3310_vm0, %v3308_v0 }
 0x67f   :  { %3088 = vmatpush1.bf16.msra.mxu0 %v3671_v44  ;;  %3118 = vmatpush3.bf16.msra.mxu1 %v3768_v32 }
 0x680   :  { %3090 = vmatprep.subr.bf16.mxu0 %v3675_v1  ;;  %3119 = vmatprep.subr.bf16.mxu1 %v3309_v40 }
 0x683   :  { %3092 = vmatpush1.bf16.msra.mxu0 %v3677_v8  ;;  %3121 = vmatpush3.bf16.msra.mxu1 %v3772_v54 }
 0x684   :  { %3094 = vmatprep.subr.bf16.mxu0 %v3681_v14  ;;  %3122 = vmatprep.subr.bf16.mxu1 %v3309_v40 }
 0x687   :  { %3096 = vmatpush1.bf16.msra.mxu0 %v3683_v21  ;;  %3124 = vmatpush3.bf16.msra.mxu1 %v3686_v27 }
 0x688   :  { %3098 = vmatprep.subr.bf16.mxu0 %v3690_v33  ;;  %3125 = vmatprep.subr.bf16.mxu1 %v3309_v40 }
 0x68b   :  { %3100 = vmatpush1.bf16.msra.mxu0 %v3693_v18  ;;  %3127 = vmatpush3.bf16.msra.mxu1 %v3696_v26 }
 0x68c   :  { %3102 = vmatprep.subr.bf16.mxu0 %v3700_v46  ;;  %3128 = vmatprep.subr.bf16.mxu1 %v3309_v40 }
 0x68f   :  { %3104 = vmatpush1.bf16.msra.mxu0 %v3703_v4  ;;  %3130 = vmatpush3.bf16.msra.mxu1 %v3705_v10 }
 0x690   :  { %3106 = vmatprep.subr.bf16.mxu0 %v3708_v23  ;;  %3131 = vmatprep.subr.bf16.mxu1 %v3309_v40 }
 0x693   :  { %3108 = vmatpush1.bf16.msra.mxu0 %v3711_v43  ;;  %3133 = vmatpush3.bf16.msra.mxu1 %v3715_v41 }
 0x694   :  { %3110 = vmatprep.subr.bf16.mxu0 %v3717_v49  ;;  %3134 = vmatprep.subr.bf16.mxu1 %v3309_v40 }
 0x697   :  { %3112 = vmatpush1.bf16.msra.mxu0 %v3721_v60  ;;  %3136 = vmatpush3.bf16.msra.mxu1 %v3725_v63 }
 0x74d   :  { %v1790_v0 = vpop.f32.mrb[12].mxu0  ;;  %v1861_v53 = vpop.f32.mrb[20].mxu1 }
 0x74e   :  { %v3149_v52 = vadd.f32 %v1790_v0, %v3545_v3  ;;  %v1792_v58 = vpop.f32.mrb[13].mxu0  ;;  %v2589_v44 = vpop.f32.mrb[21].mxu1  ;;  %v1879_v18 = vadd.f32 %v3554_v28, %v1861_v53 }
 0x74f   :  { %v3150_v8 = vadd.f32 %v1792_v58, %v3547_v6 }
 0x750   :  { %v2135_v1 = vmul.f32 -1.442695, %v3149_v52 }
 0x751   :  { %v2136_v14 = vmul.f32 -1.442695, %v3150_v8 }
 0x752   :  { %3236 = vpow2.f32 %v2135_v1 }
 0x753   :  { %3238 = vpow2.f32 %v2136_v14 }
 0x75c   :  { %v3237_v21 = vpop.eup %3236 }
 0x75d   :  { %v1869_v27 = vadd.f32 1.0, %v3237_v21  ;;  %v3239_v40 = vpop.eup %3238 }
 0x75e   :  { %v1876_v33 = vadd.f32 1.0, %v3239_v40 }
 0x75f   :  { %3240 = vrcp.f32 %v1869_v27 }
 0x760   :  { %3242 = vrcp.f32 %v1876_v33 }
 0x769   :  { %v3241_v26 = vpop.eup %3240 }
 0x76a   :  { %v1880_v46 = vmul.f32 %v3241_v26, %v1879_v18  ;;  %v3243_v10 = vpop.eup %3242 }
 0x76b   :  { %v1883_v23 = vsub.f32 1.0, %v3243_v10  ;;  %v1885_v49 = vmul.f32 %v3243_v10, %v1669_v22 }
 0x76c   :  { %v1881_v4 = vadd.f32 %v1880_v46, %v3543_v62 }
 0x76e   :  { %3244 = vtanh.f32 %v1881_v4 }
 0x778   :  { %v3245_v43 = vpop.eup %3244 }
 0x779   :  { %v1884_v41 = vmul.f32 %v3245_v43, %v1883_v23 }
 0x77b   :  { %v1886_v60 = vadd.f32 %v1885_v49, %v1884_v41 }
 0x77d   :  { %2137 = vst [vmem:[%s3897_s5 + $0x30] sm:$0xff] %v1886_v60  ;;  %2006 = vmatmul.mubr.f32.vlgmr.msra.gmra.mrb[14].mxu0 %v1886_v60  ;;  %2623 = vmatmul.mubr.f32.vlgmr.msra.gmra.mrb[22].mxu1 %v1886_v60 }
 0x850   :  { %v2007_v63 = vpop.f32.mrb[14].mxu0  ;;  %v2078_v20 = vpop.f32.mrb[22].mxu1 }
 0x851   :  { %v3151_v32 = vadd.f32 %v2007_v63, %v3545_v3  ;;  %v2009_v54 = vpop.f32.mrb[15].mxu0  ;;  %v2624_v30 = vpop.f32.mrb[23].mxu1  ;;  %v2096_v35 = vadd.f32 %v3554_v28, %v2078_v20 }
 0x852   :  { %v3152_v31 = vadd.f32 %v2009_v54, %v3547_v6 }
 0x853   :  { %v2138_v62 = vmul.f32 -1.442695, %v3151_v32 }
 0x854   :  { %v2139_v36 = vmul.f32 -1.442695, %v3152_v31 }
 0x855   :  { %3246 = vpow2.f32 %v2138_v62 }
 0x856   :  { %3248 = vpow2.f32 %v2139_v36 }
 0x85f   :  { %v3247_v37 = vpop.eup %3246 }
 0x860   :  { %v2086_v17 = vadd.f32 1.0, %v3247_v37  ;;  %v3249_v25 = vpop.eup %3248 }
 0x861   :  { %v2093_v34 = vadd.f32 1.0, %v3249_v25 }
 0x862   :  { %3250 = vrcp.f32 %v2086_v17 }
 0x863   :  { %3252 = vrcp.f32 %v2093_v34 }
 0x86c   :  { %v3251_v45 = vpop.eup %3250 }
 0x86d   :  { %v2097_v55 = vmul.f32 %v3251_v45, %v2096_v35  ;;  %v3253_v56 = vpop.eup %3252 }
 0x86e   :  { %v2100_v57 = vsub.f32 1.0, %v3253_v56  ;;  %v2102_v13 = vmul.f32 %v3253_v56, %v1886_v60 }
 0x86f   :  { %v2098_v3 = vadd.f32 %v2097_v55, %v3541_v59 }
 0x871   :  { %3254 = vtanh.f32 %v2098_v3 }
 0x87b   :  { %v3255_v2 = vpop.eup %3254 }
 0x87c   :  { %v2101_v6 = vmul.f32 %v3255_v2, %v2100_v57 }
 0x87e   :  { %v2103_v15 = vadd.f32 %v2102_v13, %v2101_v6 }
 0x880   :  { %2140 = vst [vmem:[%s3897_s5 + $0x38] sm:$0xff] %v2103_v15  ;;  %2106 = vst [vmem:[%s3898_s6] sm:$0xff] %v2103_v15 }
 0x881   :  { %2115 = vsyncpa [#allocation4], 1 }
 0x882   :  { %2116 = vsyncpa [#allocation6], 1 }

</bundles_post_ra>
